<compile_context>
chip_gen: v6e
topology: v6e:2x2x1
jax: 0.10.0
libtpu: 0.0.40
codegen_flags: <defaults>
</compile_context>

<pallas_src>
import functools

import jax
import jax.numpy as jnp
from jax.experimental import pallas as pl
from jax.experimental.pallas import tpu as pltpu


# ----------------------------------------------------------------------------
# Kernel
# ----------------------------------------------------------------------------
def _remixer_kernel(alpha_ref, x_ref, w_x_ref, w_g_ref, mixer_sm_ref, w_out_ref,
                    o_ref, *, gelu_approximate):
    """One grid step: a (bt, N, D) batch tile of the RemixerBlock forward.

    alpha_ref (SMEM, (2,), f32): [sigmoid(alpha), 1 - sigmoid(alpha)]
    x_ref     (VMEM, (bt, N, D), compute dtype)
    w_x_ref / w_g_ref / w_out_ref (VMEM, (D, D)): split proj_in + proj_out
    mixer_sm_ref (VMEM, (N, N)): softmax(mixer), causal mask already applied
    """
    bt = x_ref.shape[0]
    cdt = x_ref.dtype

    a = alpha_ref[0]
    one_minus_a = alpha_ref[1]

    w_x = w_x_ref[...]
    w_g = w_g_ref[...]
    mixer = mixer_sm_ref[...]
    w_out = w_out_ref[...]

    # Per-batch 2-D matmuls: guaranteed MXU lowering, no reshape copies, no
    # mixer broadcast, temporaries bounded to (N, D) f32 tiles.
    for b in range(bt):
        xb = x_ref[b]                                                  # (N, D)
        xw = jnp.dot(xb, w_x, preferred_element_type=jnp.float32)      # (N, D) f32
        gate = jnp.dot(xb, w_g, preferred_element_type=jnp.float32)    # (N, D) f32
        # tanh-approx GELU routes through the EUP slot (VALU stays free).
        h = jax.nn.gelu(gate, approximate=gelu_approximate) * xw       # (N, D) f32
        # Token mixing: mixed[m, d] = sum_n softmax(mixer)[m, n] * h[n, d].
        mixed = jnp.dot(mixer, h.astype(cdt),
                        preferred_element_type=jnp.float32)            # (N, D) f32
        out = h * mixed * a + (h - mixed) * one_minus_a                # (N, D) f32
        y = jnp.dot(out.astype(cdt), w_out,
                    preferred_element_type=jnp.float32)                # (N, D) f32
        o_ref[b] = y.astype(o_ref.dtype)


# ----------------------------------------------------------------------------
# Sizing helpers
# ----------------------------------------------------------------------------
def _vmem_capacity_bytes(default_bytes=64 << 20):
    """Physical VMEM per core; falls back to the smallest current part (v7x)."""
    try:
        info = pltpu.get_tpu_info()
        cap = int(getattr(info, "vmem_capacity_bytes", 0) or 0)
        if cap > 0:
            return cap
    except Exception:
        pass
    return default_bytes


def _pick_batch_tile(batch, seq_len, *, fits, target_rows=512, max_bt=16):
    """Pick the per-grid-step batch tile.

    Chooses a divisor of `batch` that (a) fits the VMEM budget, (b) keeps the
    grid length >= 2 when possible (both v7x TensorCores get work; harmless on
    single-core v5e/v6e), and (c) targets ~target_rows rows per step so the
    ~0.35us per-grid-step overhead and DMA granularity are amortized.
    """
    divisors = [d for d in range(1, batch + 1) if batch % d == 0]
    cands = [d for d in divisors if d <= max_bt and fits(d)] or [1]
    if batch > 1:
        multi = [d for d in cands if batch // d >= 2]
        if multi:
            cands = multi
    under = [d for d in cands if d * seq_len <= target_rows]
    return max(under) if under else min(cands)


# ----------------------------------------------------------------------------
# Wrapper
# ----------------------------------------------------------------------------
def remixer_block(x, w_in, mixer, alpha, w_out, *, causal=False, bt=None,
                  compute_dtype=None, gelu_approximate=True):
    """RemixerBlock forward (bias-free), matching the PyTorch module.

    x: (B, N, D); w_in: (D, 2D) (pre-transposed proj_in weight, y = x @ w_in);
    mixer: (N, N); alpha: scalar; w_out: (D, D) (pre-transposed proj_out).
    compute_dtype: dtype fed to the MXU (e.g. jnp.bfloat16); accumulation and
    the elementwise epilogue stay in f32.  Defaults to x.dtype.
    """
    B, N, D = x.shape
    cdt = jnp.dtype(compute_dtype) if compute_dtype is not None else jnp.dtype(x.dtype)

    # ---- batch-invariant preprocessing (done once in XLA) -------------------
    # TODO(synk): pad D (and the weights) to a multiple of 128 for lane-dense
    # output stores when the model dim is not already a multiple of 128.
    w_x = w_in[:, :D].astype(cdt)
    w_g = w_in[:, D:].astype(cdt)
    w_o = w_out.astype(cdt)
    x_c = x.astype(cdt)

    mixer_f32 = mixer.astype(jnp.float32)
    if causal:
        mask = jnp.triu(jnp.ones((N, N), dtype=bool), k=1)
        mixer_f32 = jnp.where(mask, -jnp.finfo(jnp.float32).max, mixer_f32)
    mixer_sm = jax.nn.softmax(mixer_f32, axis=-1).astype(cdt)

    a = jax.nn.sigmoid(jnp.asarray(alpha, jnp.float32))
    alpha_vec = jnp.stack([a, 1.0 - a]).astype(jnp.float32)   # -> SMEM via prefetch

    # ---- VMEM budget & tiling ------------------------------------------------
    cds = cdt.itemsize
    ods = jnp.dtype(x.dtype).itemsize
    vmem_cap = _vmem_capacity_bytes()
    vmem_budget = int(0.8 * vmem_cap)
    single_buffer_weights = hasattr(pl, "Buffered")
    weight_bufs = 1 if single_buffer_weights else 2

    def block_bytes(bt_, wbufs):
        x_out = 2 * bt_ * N * D * (cds + ods)          # double-buffered x + out
        weights = wbufs * (3 * D * D + N * N) * cds    # resident weights + mixer
        temps = 8 * N * D * 4                          # per-batch f32 temporaries
        return x_out + weights + temps

    if bt is None:
        bt = _pick_batch_tile(
            B, N, fits=lambda t: block_bytes(t, weight_bufs) <= vmem_budget)
    if B % bt != 0:  # user-supplied bt that doesn't divide B: round down
        bt = max(d for d in range(1, min(int(bt), B) + 1) if B % d == 0)
    grid = (B // bt,)

    vmem_limit = int(min(max(block_bytes(bt, weight_bufs) + (4 << 20), 32 << 20),
                         vmem_cap))

    # Advisory cost hint for XLA's scheduler.
    flops = 6 * B * N * D * D + 2 * B * N * N * D
    bytes_accessed = 2 * B * N * D * max(cds, ods) + (3 * D * D + N * N) * cds
    try:
        cost = pl.CostEstimate(flops=int(flops), transcendentals=int(B * N * D),
                               bytes_accessed=int(bytes_accessed))
    except Exception:
        cost = None

    kernel = functools.partial(_remixer_kernel, gelu_approximate=gelu_approximate)

    def build(use_buffered):
        def const_spec(shape):
            index_map = lambda i, alpha_ref: (0,) * len(shape)
            if use_buffered:
                # Grid-invariant operand: one VMEM buffer instead of two.
                return pl.BlockSpec(shape, index_map, pipeline_mode=pl.Buffered(1))
            return pl.BlockSpec(shape, index_map)

        grid_spec = pltpu.PrefetchScalarGridSpec(
            num_scalar_prefetch=1,                                        # alpha_vec
            grid=grid,
            in_specs=[
                pl.BlockSpec((bt, N, D), lambda i, alpha_ref: (i, 0, 0)),  # x
                const_spec((D, D)),                                        # w_x
                const_spec((D, D)),                                        # w_gate
                const_spec((N, N)),                                        # softmax(mixer)
                const_spec((D, D)),                                        # w_out
            ],
            out_specs=pl.BlockSpec((bt, N, D), lambda i, alpha_ref: (i, 0, 0)),
        )
        return pl.pallas_call(
            kernel,
            out_shape=jax.ShapeDtypeStruct((B, N, D), x.dtype),
            grid_spec=grid_spec,
            compiler_params=pltpu.CompilerParams(
                dimension_semantics=("parallel",),
                vmem_limit_bytes=vmem_limit,
            ),
            cost_estimate=cost,
        )

    args = (alpha_vec, x_c, w_x, w_g, mixer_sm, w_o)
    try:
        return build(single_buffer_weights)(*args)
    except Exception:
        if not single_buffer_weights:
            raise
        # Portability fallback: default (double-buffered) weight operands.
        return build(False)(*args)


# ----------------------------------------------------------------------------
# Pure-JAX reference mirroring the PyTorch forward
# ----------------------------------------------------------------------------
def remixer_block_ref(x, w_in, mixer, alpha, w_out, *, causal=False,
                      gelu_approximate=True):
    D = x.shape[-1]
    proj = x @ w_in
    x_part, gate = proj[..., :D], proj[..., D:]
    h = jax.nn.gelu(gate, approximate=gelu_approximate) * x_part
    m = mixer.astype(jnp.float32)
    if causal:
        N = x.shape[1]
        mask = jnp.triu(jnp.ones((N, N), dtype=bool), k=1)
        m = jnp.where(mask, -jnp.finfo(jnp.float32).max, m)
    mixer_sm = jax.nn.softmax(m, axis=-1).astype(x.dtype)
    mixed = jnp.einsum("bnd,mn->bmd", h, mixer_sm)
    a = jax.nn.sigmoid(jnp.asarray(alpha, x.dtype))
    out = h * mixed * a + (h - mixed) * (1.0 - a)
    return out @ w_out


# ----------------------------------------------------------------------------
# Demo / self-test
# ----------------------------------------------------------------------------
if __name__ == "__main__":
    # Small shapes; D is a multiple of 128 so output stores are lane-dense.
    B, N, D = 4, 8, 128

    key = jax.random.PRNGKey(0)
    k_x, k_win, k_mix, k_wout = jax.random.split(key, 4)

    x = jax.random.normal(k_x, (B, N, D), dtype=jnp.float32)
    w_in = jax.random.normal(k_win, (D, 2 * D), dtype=jnp.float32) * (1.0 / D ** 0.5)
    mixer = jax.random.normal(k_mix, (N, N), dtype=jnp.float32)
    alpha = jnp.float32(0.0)
    w_out = jax.random.normal(k_wout, (D, D), dtype=jnp.float32) * (1.0 / D ** 0.5)

    # TODO(synk): exact-erf GELU (PyTorch F.gelu default) is only exposed via
    # gelu_approximate=False; the demo uses the tanh approximation per perf
    # guidance and checks closeness to the exact-erf reference separately.

    # 1) f32 path, non-causal (tight tolerance vs matching reference).
    out = jax.block_until_ready(remixer_block(x, w_in, mixer, alpha, w_out))
    ref = remixer_block_ref(x, w_in, mixer, alpha, w_out, gelu_approximate=True)
    assert jnp.allclose(out, ref, atol=2e-4, rtol=2e-4), "mismatch (non-causal)"

    # Semantic fidelity vs the exact-erf (PyTorch-default) reference.
    ref_exact = remixer_block_ref(x, w_in, mixer, alpha, w_out, gelu_approximate=False)
    assert jnp.allclose(out, ref_exact, atol=5e-2, rtol=5e-2), "far from erf reference"

    # 2) f32 path, causal.
    out_c = jax.block_until_ready(
        remixer_block(x, w_in, mixer, alpha, w_out, causal=True))
    ref_c = remixer_block_ref(x, w_in, mixer, alpha, w_out, causal=True,
                              gelu_approximate=True)
    assert jnp.allclose(out_c, ref_c, atol=2e-4, rtol=2e-4), "mismatch (causal)"

    # 3) bf16-compute path (MXU fed bf16, f32 accumulation) vs f32 reference.
    out_bf = jax.block_until_ready(
        remixer_block(x, w_in, mixer, alpha, w_out, compute_dtype=jnp.bfloat16))
    assert jnp.allclose(out_bf.astype(jnp.float32), ref, atol=1e-1, rtol=1e-1), \
        "mismatch (bf16 compute)"

    print("KERNEL_OK")
</pallas_src>

<mosaic_0001>
module attributes {stable_mosaic.version = 11 : i64} {
  func.func @_remixer_kernel(%arg0: i32, %arg1: memref<2xf32, #tpu.memory_space<smem>>, %arg2: memref<2x8x128xf32, #tpu.memory_space<vmem>>, %arg3: memref<128x128xf32, #tpu.memory_space<vmem>>, %arg4: memref<128x128xf32, #tpu.memory_space<vmem>>, %arg5: memref<8x8xf32, #tpu.memory_space<vmem>>, %arg6: memref<128x128xf32, #tpu.memory_space<vmem>>, %arg7: memref<2x8x128xf32, #tpu.memory_space<vmem>>) attributes {dimension_semantics = [#tpu.dimension_semantics<parallel>], iteration_bounds = array<i64: 2>, scalar_prefetch = 1 : i64, scratch_operands = 0 : i64, tpu.core_type = #tpu.core_type<tc>, window_params = [{transform_indices = @transform_0, window_bounds = array<i64: 2, 8, 128>}, {pipeline_mode = #tpu.pipeline_mode<synchronous>, transform_indices = @transform_1, window_bounds = array<i64: 128, 128>}, {pipeline_mode = #tpu.pipeline_mode<synchronous>, transform_indices = @transform_2, window_bounds = array<i64: 128, 128>}, {pipeline_mode = #tpu.pipeline_mode<synchronous>, transform_indices = @transform_3, window_bounds = array<i64: 8, 8>}, {pipeline_mode = #tpu.pipeline_mode<synchronous>, transform_indices = @transform_4, window_bounds = array<i64: 128, 128>}, {transform_indices = @transform_5, window_bounds = array<i64: 2, 8, 128>}]} {
    %c0 = arith.constant 0 : index
    %0 = memref.load %arg1[%c0] : memref<2xf32, #tpu.memory_space<smem>>
    %c1 = arith.constant 1 : index
    %1 = memref.load %arg1[%c1] : memref<2xf32, #tpu.memory_space<smem>>
    %c0_0 = arith.constant 0 : index
    %c0_1 = arith.constant 0 : index
    %2 = vector.load %arg3[%c0_0, %c0_1] : memref<128x128xf32, #tpu.memory_space<vmem>>, vector<128x128xf32>
    %c0_2 = arith.constant 0 : index
    %c0_3 = arith.constant 0 : index
    %3 = vector.load %arg4[%c0_2, %c0_3] : memref<128x128xf32, #tpu.memory_space<vmem>>, vector<128x128xf32>
    %c0_4 = arith.constant 0 : index
    %c0_5 = arith.constant 0 : index
    %4 = vector.load %arg5[%c0_4, %c0_5] : memref<8x8xf32, #tpu.memory_space<vmem>>, vector<8x8xf32>
    %c0_6 = arith.constant 0 : index
    %c0_7 = arith.constant 0 : index
    %5 = vector.load %arg6[%c0_6, %c0_7] : memref<128x128xf32, #tpu.memory_space<vmem>>, vector<128x128xf32>
    %c0_8 = arith.constant 0 : index
    %c0_9 = arith.constant 0 : index
    %c0_10 = arith.constant 0 : index
    %6 = vector.load %arg2[%c0_8, %c0_9, %c0_10] : memref<2x8x128xf32, #tpu.memory_space<vmem>>, vector<1x8x128xf32>
    %7 = vector.shape_cast %6 : vector<1x8x128xf32> to vector<8x128xf32>
    %cst = arith.constant dense<0.000000e+00> : vector<8x128xf32>
    %8 = tpu.matmul %7, %2, %cst {dimension_numbers = #tpu.dot_dimension_numbers<[1], [0], [0], [1], [0, 0, 1, 1], [], []>} : vector<8x128xf32>, vector<128x128xf32>, vector<8x128xf32> -> vector<8x128xf32>
    %cst_11 = arith.constant dense<0.000000e+00> : vector<8x128xf32>
    %9 = tpu.matmul %7, %3, %cst_11 {dimension_numbers = #tpu.dot_dimension_numbers<[1], [0], [0], [1], [0, 0, 1, 1], [], []>} : vector<8x128xf32>, vector<128x128xf32>, vector<8x128xf32> -> vector<8x128xf32>
    %10 = arith.mulf %9, %9 : vector<8x128xf32>
    %11 = arith.mulf %9, %10 : vector<8x128xf32>
    %cst_12 = arith.constant 4.471500e-02 : f32
    %12 = vector.broadcast %cst_12 : f32 to vector<8x128xf32>
    %13 = arith.mulf %12, %11 : vector<8x128xf32>
    %14 = arith.addf %9, %13 : vector<8x128xf32>
    %cst_13 = arith.constant 0.797884583 : f32
    %15 = vector.broadcast %cst_13 : f32 to vector<8x128xf32>
    %16 = arith.mulf %15, %14 : vector<8x128xf32>
    %17 = math.tanh %16 : vector<8x128xf32>
    %cst_14 = arith.constant 1.000000e+00 : f32
    %18 = vector.broadcast %cst_14 : f32 to vector<8x128xf32>
    %19 = arith.addf %18, %17 : vector<8x128xf32>
    %cst_15 = arith.constant 5.000000e-01 : f32
    %20 = vector.broadcast %cst_15 : f32 to vector<8x128xf32>
    %21 = arith.mulf %20, %19 : vector<8x128xf32>
    %22 = arith.mulf %9, %21 : vector<8x128xf32>
    %23 = arith.mulf %22, %8 : vector<8x128xf32>
    %cst_16 = arith.constant dense<0.000000e+00> : vector<8x128xf32>
    %24 = tpu.matmul %4, %23, %cst_16 {dimension_numbers = #tpu.dot_dimension_numbers<[1], [0], [0], [1], [0, 0, 1, 1], [], []>} : vector<8x8xf32>, vector<8x128xf32>, vector<8x128xf32> -> vector<8x128xf32>
    %25 = arith.mulf %23, %24 : vector<8x128xf32>
    %26 = vector.broadcast %0 : f32 to vector<8x128xf32>
    %27 = arith.mulf %25, %26 : vector<8x128xf32>
    %28 = arith.subf %23, %24 : vector<8x128xf32>
    %29 = vector.broadcast %1 : f32 to vector<8x128xf32>
    %30 = arith.mulf %28, %29 : vector<8x128xf32>
    %31 = arith.addf %27, %30 : vector<8x128xf32>
    %cst_17 = arith.constant dense<0.000000e+00> : vector<8x128xf32>
    %32 = tpu.matmul %31, %5, %cst_17 {dimension_numbers = #tpu.dot_dimension_numbers<[1], [0], [0], [1], [0, 0, 1, 1], [], []>} : vector<8x128xf32>, vector<128x128xf32>, vector<8x128xf32> -> vector<8x128xf32>
    %c0_18 = arith.constant 0 : index
    %c0_19 = arith.constant 0 : index
    %c0_20 = arith.constant 0 : index
    %33 = vector.load %arg7[%c0_18, %c0_19, %c0_20] : memref<2x8x128xf32, #tpu.memory_space<vmem>>, vector<1x8x128xf32>
    %34 = vector.shape_cast %33 : vector<1x8x128xf32> to vector<8x128xf32>
    %35 = vector.shape_cast %32 : vector<8x128xf32> to vector<1x8x128xf32>
    tpu.vector_store %arg7[%c0_18, %c0_19, %c0_20], %35 {strides = array<i32>} : memref<2x8x128xf32, #tpu.memory_space<vmem>>, vector<1x8x128xf32>,
    %c1_21 = arith.constant 1 : index
    %c0_22 = arith.constant 0 : index
    %c0_23 = arith.constant 0 : index
    %36 = vector.load %arg2[%c1_21, %c0_22, %c0_23] : memref<2x8x128xf32, #tpu.memory_space<vmem>>, vector<1x8x128xf32>
    %37 = vector.shape_cast %36 : vector<1x8x128xf32> to vector<8x128xf32>
    %cst_24 = arith.constant dense<0.000000e+00> : vector<8x128xf32>
    %38 = tpu.matmul %37, %2, %cst_24 {dimension_numbers = #tpu.dot_dimension_numbers<[1], [0], [0], [1], [0, 0, 1, 1], [], []>} : vector<8x128xf32>, vector<128x128xf32>, vector<8x128xf32> -> vector<8x128xf32>
    %cst_25 = arith.constant dense<0.000000e+00> : vector<8x128xf32>
    %39 = tpu.matmul %37, %3, %cst_25 {dimension_numbers = #tpu.dot_dimension_numbers<[1], [0], [0], [1], [0, 0, 1, 1], [], []>} : vector<8x128xf32>, vector<128x128xf32>, vector<8x128xf32> -> vector<8x128xf32>
    %40 = arith.mulf %39, %39 : vector<8x128xf32>
    %41 = arith.mulf %39, %40 : vector<8x128xf32>
    %cst_26 = arith.constant 4.471500e-02 : f32
    %42 = vector.broadcast %cst_26 : f32 to vector<8x128xf32>
    %43 = arith.mulf %42, %41 : vector<8x128xf32>
    %44 = arith.addf %39, %43 : vector<8x128xf32>
    %cst_27 = arith.constant 0.797884583 : f32
    %45 = vector.broadcast %cst_27 : f32 to vector<8x128xf32>
    %46 = arith.mulf %45, %44 : vector<8x128xf32>
    %47 = math.tanh %46 : vector<8x128xf32>
    %cst_28 = arith.constant 1.000000e+00 : f32
    %48 = vector.broadcast %cst_28 : f32 to vector<8x128xf32>
    %49 = arith.addf %48, %47 : vector<8x128xf32>
    %cst_29 = arith.constant 5.000000e-01 : f32
    %50 = vector.broadcast %cst_29 : f32 to vector<8x128xf32>
    %51 = arith.mulf %50, %49 : vector<8x128xf32>
    %52 = arith.mulf %39, %51 : vector<8x128xf32>
    %53 = arith.mulf %52, %38 : vector<8x128xf32>
    %cst_30 = arith.constant dense<0.000000e+00> : vector<8x128xf32>
    %54 = tpu.matmul %4, %53, %cst_30 {dimension_numbers = #tpu.dot_dimension_numbers<[1], [0], [0], [1], [0, 0, 1, 1], [], []>} : vector<8x8xf32>, vector<8x128xf32>, vector<8x128xf32> -> vector<8x128xf32>
    %55 = arith.mulf %53, %54 : vector<8x128xf32>
    %56 = vector.broadcast %0 : f32 to vector<8x128xf32>
    %57 = arith.mulf %55, %56 : vector<8x128xf32>
    %58 = arith.subf %53, %54 : vector<8x128xf32>
    %59 = vector.broadcast %1 : f32 to vector<8x128xf32>
    %60 = arith.mulf %58, %59 : vector<8x128xf32>
    %61 = arith.addf %57, %60 : vector<8x128xf32>
    %cst_31 = arith.constant dense<0.000000e+00> : vector<8x128xf32>
    %62 = tpu.matmul %61, %5, %cst_31 {dimension_numbers = #tpu.dot_dimension_numbers<[1], [0], [0], [1], [0, 0, 1, 1], [], []>} : vector<8x128xf32>, vector<128x128xf32>, vector<8x128xf32> -> vector<8x128xf32>
    %c1_32 = arith.constant 1 : index
    %c0_33 = arith.constant 0 : index
    %c0_34 = arith.constant 0 : index
    %63 = vector.load %arg7[%c1_32, %c0_33, %c0_34] : memref<2x8x128xf32, #tpu.memory_space<vmem>>, vector<1x8x128xf32>
    %64 = vector.shape_cast %63 : vector<1x8x128xf32> to vector<8x128xf32>
    %65 = vector.shape_cast %62 : vector<8x128xf32> to vector<1x8x128xf32>
    tpu.vector_store %arg7[%c1_32, %c0_33, %c0_34], %65 {strides = array<i32>} : memref<2x8x128xf32, #tpu.memory_space<vmem>>, vector<1x8x128xf32>,
    return
  }
  func.func @transform_0(%arg0: i32, %arg1: memref<2xf32, #tpu.memory_space<smem>>) -> (i32, i32, i32) {
    %c0_i32 = arith.constant 0 : i32
    %c0_i32_0 = arith.constant 0 : i32
    %c0_i32_1 = arith.constant 0 : i32
    return %arg0, %c0_i32, %c0_i32_0 : i32, i32, i32
  }
  func.func @transform_1(%arg0: i32, %arg1: memref<2xf32, #tpu.memory_space<smem>>) -> (i32, i32) {
    %c0_i32 = arith.constant 0 : i32
    %c0_i32_0 = arith.constant 0 : i32
    %c0_i32_1 = arith.constant 0 : i32
    return %c0_i32, %c0_i32_0 : i32, i32
  }
  func.func @transform_2(%arg0: i32, %arg1: memref<2xf32, #tpu.memory_space<smem>>) -> (i32, i32) {
    %c0_i32 = arith.constant 0 : i32
    %c0_i32_0 = arith.constant 0 : i32
    %c0_i32_1 = arith.constant 0 : i32
    return %c0_i32, %c0_i32_0 : i32, i32
  }
  func.func @transform_3(%arg0: i32, %arg1: memref<2xf32, #tpu.memory_space<smem>>) -> (i32, i32) {
    %c0_i32 = arith.constant 0 : i32
    %c0_i32_0 = arith.constant 0 : i32
    %c0_i32_1 = arith.constant 0 : i32
    return %c0_i32, %c0_i32_0 : i32, i32
  }
  func.func @transform_4(%arg0: i32, %arg1: memref<2xf32, #tpu.memory_space<smem>>) -> (i32, i32) {
    %c0_i32 = arith.constant 0 : i32
    %c0_i32_0 = arith.constant 0 : i32
    %c0_i32_1 = arith.constant 0 : i32
    return %c0_i32, %c0_i32_0 : i32, i32
  }
  func.func @transform_5(%arg0: i32, %arg1: memref<2xf32, #tpu.memory_space<smem>>) -> (i32, i32, i32) {
    %c0_i32 = arith.constant 0 : i32
    %c0_i32_0 = arith.constant 0 : i32
    %c0_i32_1 = arith.constant 0 : i32
    return %arg0, %c0_i32, %c0_i32_0 : i32, i32, i32
  }
}

module attributes {stable_mosaic.version = 11 : i64} {
  func.func @_remixer_kernel(%arg0: i32, %arg1: memref<2xf32, #tpu.memory_space<smem>>, %arg2: memref<2x8x128xf32, #tpu.memory_space<vmem>>, %arg3: memref<128x128xf32, #tpu.memory_space<vmem>>, %arg4: memref<128x128xf32, #tpu.memory_space<vmem>>, %arg5: memref<8x8xf32, #tpu.memory_space<vmem>>, %arg6: memref<128x128xf32, #tpu.memory_space<vmem>>, %arg7: memref<2x8x128xf32, #tpu.memory_space<vmem>>) attributes {dimension_semantics = [#tpu.dimension_semantics<parallel>], iteration_bounds = array<i64: 2>, scalar_prefetch = 1 : i64, scratch_operands = 0 : i64, tpu.core_type = #tpu.core_type<tc>, window_params = [{transform_indices = @transform_0, window_bounds = array<i64: 2, 8, 128>}, {pipeline_mode = #tpu.pipeline_mode<synchronous>, transform_indices = @transform_1, window_bounds = array<i64: 128, 128>}, {pipeline_mode = #tpu.pipeline_mode<synchronous>, transform_indices = @transform_2, window_bounds = array<i64: 128, 128>}, {pipeline_mode = #tpu.pipeline_mode<synchronous>, transform_indices = @transform_3, window_bounds = array<i64: 8, 8>}, {pipeline_mode = #tpu.pipeline_mode<synchronous>, transform_indices = @transform_4, window_bounds = array<i64: 128, 128>}, {transform_indices = @transform_5, window_bounds = array<i64: 2, 8, 128>}]} {
    %c0 = arith.constant 0 : index
    %0 = memref.load %arg1[%c0] : memref<2xf32, #tpu.memory_space<smem>>
    %c1 = arith.constant 1 : index
    %1 = memref.load %arg1[%c1] : memref<2xf32, #tpu.memory_space<smem>>
    %c0_0 = arith.constant 0 : index
    %c0_1 = arith.constant 0 : index
    %2 = vector.load %arg3[%c0_0, %c0_1] : memref<128x128xf32, #tpu.memory_space<vmem>>, vector<128x128xf32>
    %c0_2 = arith.constant 0 : index
    %c0_3 = arith.constant 0 : index
    %3 = vector.load %arg4[%c0_2, %c0_3] : memref<128x128xf32, #tpu.memory_space<vmem>>, vector<128x128xf32>
    %c0_4 = arith.constant 0 : index
    %c0_5 = arith.constant 0 : index
    %4 = vector.load %arg5[%c0_4, %c0_5] : memref<8x8xf32, #tpu.memory_space<vmem>>, vector<8x8xf32>
    %c0_6 = arith.constant 0 : index
    %c0_7 = arith.constant 0 : index
    %5 = vector.load %arg6[%c0_6, %c0_7] : memref<128x128xf32, #tpu.memory_space<vmem>>, vector<128x128xf32>
    %c0_8 = arith.constant 0 : index
    %c0_9 = arith.constant 0 : index
    %c0_10 = arith.constant 0 : index
    %6 = vector.load %arg2[%c0_8, %c0_9, %c0_10] : memref<2x8x128xf32, #tpu.memory_space<vmem>>, vector<1x8x128xf32>
    %7 = vector.shape_cast %6 : vector<1x8x128xf32> to vector<8x128xf32>
    %cst = arith.constant dense<0.000000e+00> : vector<8x128xf32>
    %8 = tpu.matmul %7, %2, %cst {dimension_numbers = #tpu.dot_dimension_numbers<[1], [0], [0], [1], [0, 0, 1, 1], [], []>} : vector<8x128xf32>, vector<128x128xf32>, vector<8x128xf32> -> vector<8x128xf32>
    %cst_11 = arith.constant dense<0.000000e+00> : vector<8x128xf32>
    %9 = tpu.matmul %7, %3, %cst_11 {dimension_numbers = #tpu.dot_dimension_numbers<[1], [0], [0], [1], [0, 0, 1, 1], [], []>} : vector<8x128xf32>, vector<128x128xf32>, vector<8x128xf32> -> vector<8x128xf32>
    %10 = arith.mulf %9, %9 : vector<8x128xf32>
    %11 = arith.mulf %9, %10 : vector<8x128xf32>
    %cst_12 = arith.constant 4.471500e-02 : f32
    %12 = vector.broadcast %cst_12 : f32 to vector<8x128xf32>
    %13 = arith.mulf %12, %11 : vector<8x128xf32>
    %14 = arith.addf %9, %13 : vector<8x128xf32>
    %cst_13 = arith.constant 0.797884583 : f32
    %15 = vector.broadcast %cst_13 : f32 to vector<8x128xf32>
    %16 = arith.mulf %15, %14 : vector<8x128xf32>
    %17 = math.tanh %16 : vector<8x128xf32>
    %cst_14 = arith.constant 1.000000e+00 : f32
    %18 = vector.broadcast %cst_14 : f32 to vector<8x128xf32>
    %19 = arith.addf %18, %17 : vector<8x128xf32>
    %cst_15 = arith.constant 5.000000e-01 : f32
    %20 = vector.broadcast %cst_15 : f32 to vector<8x128xf32>
    %21 = arith.mulf %20, %19 : vector<8x128xf32>
    %22 = arith.mulf %9, %21 : vector<8x128xf32>
    %23 = arith.mulf %22, %8 : vector<8x128xf32>
    %cst_16 = arith.constant dense<0.000000e+00> : vector<8x128xf32>
    %24 = tpu.matmul %4, %23, %cst_16 {dimension_numbers = #tpu.dot_dimension_numbers<[1], [0], [0], [1], [0, 0, 1, 1], [], []>} : vector<8x8xf32>, vector<8x128xf32>, vector<8x128xf32> -> vector<8x128xf32>
    %25 = arith.mulf %23, %24 : vector<8x128xf32>
    %26 = vector.broadcast %0 : f32 to vector<8x128xf32>
    %27 = arith.mulf %25, %26 : vector<8x128xf32>
    %28 = arith.subf %23, %24 : vector<8x128xf32>
    %29 = vector.broadcast %1 : f32 to vector<8x128xf32>
    %30 = arith.mulf %28, %29 : vector<8x128xf32>
    %31 = arith.addf %27, %30 : vector<8x128xf32>
    %cst_17 = arith.constant dense<0.000000e+00> : vector<8x128xf32>
    %32 = tpu.matmul %31, %5, %cst_17 {dimension_numbers = #tpu.dot_dimension_numbers<[1], [0], [0], [1], [0, 0, 1, 1], [], []>} : vector<8x128xf32>, vector<128x128xf32>, vector<8x128xf32> -> vector<8x128xf32>
    %c0_18 = arith.constant 0 : index
    %c0_19 = arith.constant 0 : index
    %c0_20 = arith.constant 0 : index
    %33 = vector.load %arg7[%c0_18, %c0_19, %c0_20] : memref<2x8x128xf32, #tpu.memory_space<vmem>>, vector<1x8x128xf32>
    %34 = vector.shape_cast %33 : vector<1x8x128xf32> to vector<8x128xf32>
    %35 = vector.shape_cast %32 : vector<8x128xf32> to vector<1x8x128xf32>
    tpu.vector_store %arg7[%c0_18, %c0_19, %c0_20], %35 {strides = array<i32>} : memref<2x8x128xf32, #tpu.memory_space<vmem>>, vector<1x8x128xf32>,
    %c1_21 = arith.constant 1 : index
    %c0_22 = arith.constant 0 : index
    %c0_23 = arith.constant 0 : index
    %36 = vector.load %arg2[%c1_21, %c0_22, %c0_23] : memref<2x8x128xf32, #tpu.memory_space<vmem>>, vector<1x8x128xf32>
    %37 = vector.shape_cast %36 : vector<1x8x128xf32> to vector<8x128xf32>
    %cst_24 = arith.constant dense<0.000000e+00> : vector<8x128xf32>
    %38 = tpu.matmul %37, %2, %cst_24 {dimension_numbers = #tpu.dot_dimension_numbers<[1], [0], [0], [1], [0, 0, 1, 1], [], []>} : vector<8x128xf32>, vector<128x128xf32>, vector<8x128xf32> -> vector<8x128xf32>
    %cst_25 = arith.constant dense<0.000000e+00> : vector<8x128xf32>
    %39 = tpu.matmul %37, %3, %cst_25 {dimension_numbers = #tpu.dot_dimension_numbers<[1], [0], [0], [1], [0, 0, 1, 1], [], []>} : vector<8x128xf32>, vector<128x128xf32>, vector<8x128xf32> -> vector<8x128xf32>
    %40 = arith.mulf %39, %39 : vector<8x128xf32>
    %41 = arith.mulf %39, %40 : vector<8x128xf32>
    %cst_26 = arith.constant 4.471500e-02 : f32
    %42 = vector.broadcast %cst_26 : f32 to vector<8x128xf32>
    %43 = arith.mulf %42, %41 : vector<8x128xf32>
    %44 = arith.addf %39, %43 : vector<8x128xf32>
    %cst_27 = arith.constant 0.797884583 : f32
    %45 = vector.broadcast %cst_27 : f32 to vector<8x128xf32>
    %46 = arith.mulf %45, %44 : vector<8x128xf32>
    %47 = math.tanh %46 : vector<8x128xf32>
    %cst_28 = arith.constant 1.000000e+00 : f32
    %48 = vector.broadcast %cst_28 : f32 to vector<8x128xf32>
    %49 = arith.addf %48, %47 : vector<8x128xf32>
    %cst_29 = arith.constant 5.000000e-01 : f32
    %50 = vector.broadcast %cst_29 : f32 to vector<8x128xf32>
    %51 = arith.mulf %50, %49 : vector<8x128xf32>
    %52 = arith.mulf %39, %51 : vector<8x128xf32>
    %53 = arith.mulf %52, %38 : vector<8x128xf32>
    %cst_30 = arith.constant dense<0.000000e+00> : vector<8x128xf32>
    %54 = tpu.matmul %4, %53, %cst_30 {dimension_numbers = #tpu.dot_dimension_numbers<[1], [0], [0], [1], [0, 0, 1, 1], [], []>} : vector<8x8xf32>, vector<8x128xf32>, vector<8x128xf32> -> vector<8x128xf32>
    %55 = arith.mulf %53, %54 : vector<8x128xf32>
    %56 = vector.broadcast %0 : f32 to vector<8x128xf32>
    %57 = arith.mulf %55, %56 : vector<8x128xf32>
    %58 = arith.subf %53, %54 : vector<8x128xf32>
    %59 = vector.broadcast %1 : f32 to vector<8x128xf32>
    %60 = arith.mulf %58, %59 : vector<8x128xf32>
    %61 = arith.addf %57, %60 : vector<8x128xf32>
    %cst_31 = arith.constant dense<0.000000e+00> : vector<8x128xf32>
    %62 = tpu.matmul %61, %5, %cst_31 {dimension_numbers = #tpu.dot_dimension_numbers<[1], [0], [0], [1], [0, 0, 1, 1], [], []>} : vector<8x128xf32>, vector<128x128xf32>, vector<8x128xf32> -> vector<8x128xf32>
    %c1_32 = arith.constant 1 : index
    %c0_33 = arith.constant 0 : index
    %c0_34 = arith.constant 0 : index
    %63 = vector.load %arg7[%c1_32, %c0_33, %c0_34] : memref<2x8x128xf32, #tpu.memory_space<vmem>>, vector<1x8x128xf32>
    %64 = vector.shape_cast %63 : vector<1x8x128xf32> to vector<8x128xf32>
    %65 = vector.shape_cast %62 : vector<8x128xf32> to vector<1x8x128xf32>
    tpu.vector_store %arg7[%c1_32, %c0_33, %c0_34], %65 {strides = array<i32>} : memref<2x8x128xf32, #tpu.memory_space<vmem>>, vector<1x8x128xf32>,
    return
  }
  func.func @transform_0(%arg0: i32, %arg1: memref<2xf32, #tpu.memory_space<smem>>) -> (i32, i32, i32) {
    %c0_i32 = arith.constant 0 : i32
    %c0_i32_0 = arith.constant 0 : i32
    %c0_i32_1 = arith.constant 0 : i32
    return %arg0, %c0_i32, %c0_i32_0 : i32, i32, i32
  }
  func.func @transform_1(%arg0: i32, %arg1: memref<2xf32, #tpu.memory_space<smem>>) -> (i32, i32) {
    %c0_i32 = arith.constant 0 : i32
    %c0_i32_0 = arith.constant 0 : i32
    %c0_i32_1 = arith.constant 0 : i32
    return %c0_i32, %c0_i32_0 : i32, i32
  }
  func.func @transform_2(%arg0: i32, %arg1: memref<2xf32, #tpu.memory_space<smem>>) -> (i32, i32) {
    %c0_i32 = arith.constant 0 : i32
    %c0_i32_0 = arith.constant 0 : i32
    %c0_i32_1 = arith.constant 0 : i32
    return %c0_i32, %c0_i32_0 : i32, i32
  }
  func.func @transform_3(%arg0: i32, %arg1: memref<2xf32, #tpu.memory_space<smem>>) -> (i32, i32) {
    %c0_i32 = arith.constant 0 : i32
    %c0_i32_0 = arith.constant 0 : i32
    %c0_i32_1 = arith.constant 0 : i32
    return %c0_i32, %c0_i32_0 : i32, i32
  }
  func.func @transform_4(%arg0: i32, %arg1: memref<2xf32, #tpu.memory_space<smem>>) -> (i32, i32) {
    %c0_i32 = arith.constant 0 : i32
    %c0_i32_0 = arith.constant 0 : i32
    %c0_i32_1 = arith.constant 0 : i32
    return %c0_i32, %c0_i32_0 : i32, i32
  }
  func.func @transform_5(%arg0: i32, %arg1: memref<2xf32, #tpu.memory_space<smem>>) -> (i32, i32, i32) {
    %c0_i32 = arith.constant 0 : i32
    %c0_i32_0 = arith.constant 0 : i32
    %c0_i32_1 = arith.constant 0 : i32
    return %arg0, %c0_i32, %c0_i32_0 : i32, i32, i32
  }
}

</mosaic_0001>

<bundles_post_ra>
// kernel: tpu_custom_call.1
= control target key start
LH: loop header
LB: loop body
LE: loop exit
PB: predicated region body
PF: predicated region fallthrough
CT: control target
= control target key end

     0   :  { %s1753_s21 = smov [#allocation3]   ;;  %s2340_s0 = inlined_call_operand.hbm [shape: f32[2], index: 0, kind: input, shape index: {}]   ;;  %s2341_s1 = inlined_call_operand.hbm [shape: f32[4,8,128], index: 1, kind: input, shape index: {}]   ;;  %s2342_s2 = inlined_call_operand.hbm [shape: f32[128,128], index: 2, kind: input, shape index: {}]   ;;  %s2343_s3 = inlined_call_operand.hbm [shape: f32[128,128], index: 3, kind: input, shape index: {}]   ;;  %s2344_s4 = inlined_call_operand.hbm [shape: f32[8,8], index: 4, kind: input, shape index: {}]   ;;  %s2345_s5 = inlined_call_operand.hbm [shape: f32[128,128], index: 5, kind: input, shape index: {}]   ;;  %s2346_s6 = inlined_call_operand.hbm [shape: f32[4,8,128], index: 6, kind: output, shape index: {}]  }
   0x1   :  { %12 = dma.hbm_to_smem %s2340_s0, 16, %s1753_s21, [#allocation2] }
   0x2   :  { %1719 = dma.done.wait [#allocation2], 16 }
   0x3   :  { %1720 = vsyncadd [#allocation2], 4294967280 }
   0x4   :  { %14 = sfence }
   0x5   :  { %15 = vsyncpa [#allocation5], 0 }
   0x6   :  { %17 = vsyncpa [#allocation5 + $0x1], 0 }
   0x7   :  { %18 = vsyncpa [#allocation8], 0 }
   0x8   :  { %19 = vsyncpa [#allocation11], 0 }
   0x9   :  { %20 = vsyncpa [#allocation6], 0 }
   0xa   :  { %22 = vsyncpa [#allocation6 + $0x1], 0  ;;  %s1804_s24 = smov 0   ;;  %s1806_s25 = smov 0  }
   0xb   :  { %s1808_s26 = smov 0   ;;  %s1810_s27 = smov 0  }
   0xc LB: > { %s1825_s0 = sadd.s32 4294967295, %s1751_s27   ;;  %s1084_s28 = sadd.s32 4294967294, %s1751_s27   ;;  %s1751_s27 = sphi %s1810_s27, %s2372_s27   ;;  %s1747_s26 = sphi %s1808_s26, %s2371_s26   ;;  %s1743_s25 = sphi %s1806_s25, %s2370_s25   ;;  %s1739_s24 = sphi %s1804_s24, %s2369_s24  }
   0xd   : > { %p48_p0 = scmp.ne.s32.totalorder %s1743_s25, %s1739_s24  ;;  %p2347_p1 = scmp.eq.s32.totalorder %s1825_s0, 0 }
   0xe   : > { %p162_p3 = scmp.eq.s32.totalorder %s1084_s28, 1  ;;  %p1085_p5 = scmp.ge.s32.totalorder %s1751_s27, 1 }
   0xf   : > { %p1834_p4 = por %p2347_p1, %p48_p0  ;;  %p169_p7 = scmp.lt.s32.totalorder %s1751_s27, 3 }
  0x10   : > { %p1839_p6 = por %p162_p3, %p48_p0  ;;  %s1754_s8 = smov [#allocation7]  }
  0x11   : > { %s2352_s29 = scalar_select %p1834_p4, 1, 0 }
  0x12   : > { %s2353_s30 = scalar_select %p1839_p6, 1, 0 }
  0x13   : > { %p1844_p8 = pnand %p1085_p5, %p169_p7  ;;  %s181_s9 = sshll.u32 %s1754_s8, 4  ;;  %s182_s9 = int_to_ptr.vmem [resolvable:$true] %s181_s9 }
  0x14   : > { %s1755_s11 = smov [#allocation10]   ;;  %s1756_s13 = smov [#allocation9]  }
  0x15   : > { %s2354_s7 = scalar_select %p1844_p8, 1, 0 }
  0x16   : > { %p1459_p9 = pneg %p1844_p8  ;;  %s208_s12 = sshll.u32 %s1755_s11, 4  ;;  %s209_s12 = int_to_ptr.vmem [resolvable:$true] %s208_s12 }
  0x17   : > { %s194_s14 = sshll.u32 %s1756_s13, 4  ;;  %s1556_s15 = scalar_lea.vmem %s182_s9, 2048  ;;  %s195_s14 = int_to_ptr.vmem [resolvable:$true] %s194_s14 }
  0x18   : > { %p1853_p11 = pnand %p1459_p9, %p2347_p1  ;;  %p1557_p13 = scmp.ne.s32.totalorder %s182_s9, %s1556_s15 }
  0x19   : > { %p1564_p5 = scmp.lt.s32.totalorder %s182_s9, %s182_s9  ;;  %p1565_p7 = scmp.lt.s32.totalorder %s1556_s15, %s1556_s15 }
  0x1a   : > { %p1547_p12 = pneg %p1853_p11 }
  0x1b   : > { %p1566_p9 = por %p1565_p7, %p1564_p5 }
  0x1c   : > { %p1559_p0 = pnand %p1557_p13, %p1547_p12 }
  0x1e   : > { %p1560_p3 = pneg %p1559_p0 }
  0x20   : > { %p1567_p10 = pnand %p1566_p9, %p1560_p3 }
  0x22   : > { %1570 = shalt.err (!%p1567_p10)
}
  0x23   : > { %s2349_s16 = smov 128   ;;  %s1758_s17 = smov 8  }
  0x24   : > { %1462 = dma.hbm_to_vmem [thread:$0]  (!%p1853_p11), %s2342_s2, 2048, %s182_s9, [#allocation8], %s2349_s16, %s2349_s16, %s1758_s17  }
  0x25   : > { %s1582_s20 = scalar_lea.vmem %s209_s12, 128  ;;  %p1590_p3 = scmp.lt.s32.totalorder %s209_s12, %s209_s12 }
  0x26   : > { %p1583_p13 = scmp.ne.s32.totalorder %s209_s12, %s1582_s20  ;;  %p1591_p10 = scmp.lt.s32.totalorder %s1582_s20, %s1582_s20 }
  0x28   : > { %p1585_p0 = pnand %p1583_p13, %p1547_p12  ;;  %p1592_p7 = por %p1591_p10, %p1590_p3 }
  0x2a   : > { %p1586_p5 = pneg %p1585_p0 }
  0x2c   : > { %p1593_p9 = pnand %p1592_p7, %p1586_p5 }
  0x2e   : > { %1596 = shalt.err (!%p1593_p9)
}
  0x2f   : > { %1468 = dma.hbm_to_vmem [thread:$0]  (!%p1853_p11), %s2344_s4, 128, %s209_s12, [#allocation11]  }
  0x30   : > { %s1608_s23 = scalar_lea.vmem %s195_s14, 2048  ;;  %p1616_p0 = scmp.lt.s32.totalorder %s195_s14, %s195_s14 }
  0x31   : > { %p1609_p1 = scmp.ne.s32.totalorder %s195_s14, %s1608_s23  ;;  %p1617_p6 = scmp.lt.s32.totalorder %s1608_s23, %s1608_s23 }
  0x33   : > { %p1611_p2 = pnand %p1609_p1, %p1547_p12  ;;  %p1618_p4 = por %p1617_p6, %p1616_p0 }
  0x35   : > { %p1612_p13 = pneg %p1611_p2 }
  0x37   : > { %p1619_p3 = pnand %p1618_p4, %p1612_p13 }
  0x39   : > { %1622 = shalt.err (!%p1619_p3)
}
  0x3a   : > { %1465 = dma.hbm_to_vmem [thread:$0]  (!%p1853_p11), %s2343_s3, 2048, %s195_s14, [#allocation8], %s2349_s16, %s2349_s16, %s1758_s17  }
  0x3b   : > { %s1759_s9 = smov [#allocation12]  }
  0x3c   : > { %s218_s11 = sshll.u32 %s1759_s9, 4  ;;  %s219_s11 = int_to_ptr.vmem [resolvable:$true] %s218_s11 }
  0x3d   : > { %s1634_s12 = scalar_lea.vmem %s219_s11, 2048  ;;  %p1642_p6 = scmp.lt.s32.totalorder %s219_s11, %s219_s11 }
  0x3e   : > { %p1635_p1 = scmp.ne.s32.totalorder %s219_s11, %s1634_s12  ;;  %p1643_p5 = scmp.lt.s32.totalorder %s1634_s12, %s1634_s12 }
  0x40   : > { %p1637_p2 = pnand %p1635_p1, %p1547_p12  ;;  %p1644_p10 = por %p1643_p5, %p1642_p6 }
  0x42   : > { %p1638_p4 = pneg %p1637_p2 }
  0x44   : > { %p1645_p7 = pnand %p1644_p10, %p1638_p4 }
  0x46   : > { %1648 = shalt.err (!%p1645_p7)
}
  0x47   : > { %1471 = dma.hbm_to_vmem [thread:$0]  (!%p1853_p11), %s2345_s5, 2048, %s219_s11, [#allocation11], %s2349_s16, %s2349_s16, %s1758_s17  }
  0x48   : > { %s1901_s15 = sadd.s32 1, %s1751_s27   ;;  %s35_s10 = sadd.s32 1, %s1747_s26 }
  0x49   : > { %s32_s18 = ssub.s32 %s1751_s27, %s1901_s15  ;;  %p42_p12 = scmp.ne.s32.totalorder %s1747_s26, %s1743_s25 }
  0x4a   : > { %p33_p9 = scmp.eq.s32.totalorder %s32_s18, 0  ;;  %p43_p13 = scmp.eq.s32.totalorder %s1751_s27, 0 }
  0x4b   : > { %p2356_p0 = scmp.eq.s32.totalorder %s1825_s0, 1  ;;  %p1484_p1 = scmp.lt.s32.totalorder %s1751_s27, 2 }
  0x4c   : > { %s1917_s20 = scalar_select %p33_p9, %s1747_s26, %s35_s10  }
  0x4d   : > { %p1911_p3 = por %p2356_p0, %p42_p12  ;;  %p44_p2 = por %p43_p13, %p42_p12 }
  0x4e   : > { %s232_s21 = sand.u32 1, %s1747_s26   ;;  %s1111_s23 = sshll.u32 %s1751_s27, 8 }
  0x4f   : > { %s2357_s19 = scalar_select %p1911_p3, 1, 0 }
  0x50   : > { %s1091_s22 = sshll.u32 %s232_s21, 4  ;;  %s1924_s9 = scalar_lea.hbm %s2341_s1, %s1111_s23 }
  0x51   : > { %s236_s11 = scalar_lea.vmem [#allocation4], %s1091_s22  ;;  %p1928_p11 = pnand %p1484_p1, %p44_p2 }
  0x52   : > { %s243_s12 = sshll.u32 %s236_s11, 4  ;;  %s1932_s14 = scalar_lea.sflag [#allocation5], %s232_s21  ;;  %s1926_s12 = int_to_ptr.vmem [resolvable:$true] %s243_s12 }
  0x53   : > { %s1649_s10 = scalar_lea.hbm %s1924_s9, 256  ;;  %p1651_p6 = pneg %p1928_p11 }
  0x54   : > { %p1650_p4 = scmp.ne.s32.totalorder %s1924_s9, %s1649_s10  ;;  %s1654_s22 = scalar_lea.hbm %s2341_s1, 512 }
  0x55   : > { %p1655_p7 = scmp.lt.s32.totalorder %s1924_s9, %s2341_s1  ;;  %p1656_p12 = scmp.lt.s32.totalorder %s1654_s22, %s1649_s10 }
  0x56   : > { %p1652_p5 = pnand %p1651_p6, %p1650_p4 }
  0x57   : > { %p1657_p9 = por %p1656_p12, %p1655_p7 }
  0x58   : > { %p1653_p10 = pneg %p1652_p5 }
  0x5a   : > { %p1658_p13 = pnand %p1657_p9, %p1653_p10 }
  0x5c   : > { %1661 = shalt.err (!%p1658_p13)
}
  0x5d   : > { %s1662_s21 = scalar_lea.vmem %s1926_s12, 256  ;;  %s1760_s11 = smov [#allocation4]  }
  0x5e   : > { %p1663_p0 = scmp.ne.s32.totalorder %s1926_s12, %s1662_s21  ;;  %s1667_s16 = sshll.u32 %s1760_s11, 4  ;;  %s1668_s16 = int_to_ptr.vmem [resolvable:$false] %s1667_s16 }
  0x5f   : > { %s1669_s18 = scalar_lea.vmem %s1668_s16, 512  ;;  %p1670_p4 = scmp.lt.s32.totalorder %s1926_s12, %s1668_s16 }
  0x60   : > { %p1665_p1 = pnand %p1663_p0, %p1651_p6  ;;  %p1671_p5 = scmp.lt.s32.totalorder %s1669_s18, %s1662_s21 }
  0x62   : > { %p1666_p2 = pneg %p1665_p1  ;;  %p1672_p3 = por %p1671_p5, %p1670_p4 }
  0x64   : > { %p1673_p8 = pnand %p1672_p3, %p1666_p2 }
  0x66   : > { %1676 = shalt.err (!%p1673_p8)
}
  0x67   : > { %s2359_s10 = smov 128   ;;  %p2360_p6 = scmp.ne.s32.totalorder %s2354_s7, 0 }
  0x68   : > { %1475 = dma.hbm_to_vmem [thread:$0]  (!%p1928_p11), %s1924_s9, 256, %s1926_s12, %s1932_s14, %s2359_s10, %s2359_s10, %s1758_s17  }
  0x69   : > { %255 = sbr.rel (%p2360_p6) target bundleno = 1241 (0x4d9), region = 40  ;;  %s1959_s23 = sand.u32 (!%p2360_p6), 1, %s1743_s25  }
  0x6a   : > { %s1095_s16 = sshll.u32 (!%p2360_p6), %s1959_s23, 4  ;;  %s258_s22 = scalar_lea.sflag (!%p2360_p6), [#allocation5], %s1959_s23 }
  0x6b   : > { %s1965_s13 = scalar_lea.vmem (!%p2360_p6), [#allocation4], %s1095_s16  ;;  %p2361_p8 = scmp.ne.s32.totalorder (!%p2360_p6), %s2352_s29, 0 }
  0x6e   : > { %1722 = dma.done.wait (%p2361_p8), %s258_s22, 256  }
  0x6f   : > { %1724 = vsyncadd (%p2361_p8), %s258_s22, 4294967040  ;;  %p2362_p3 = scmp.eq.s32.totalorder %s1825_s0, 0 }
  0x71   : > { %1726 = dma.done.wait (%p2362_p3), [#allocation8], 4096   ;;  %p2363_p11 = pmov %p2362_p3 }
  0x72   : > { %p2364_p10 = pmov %p2362_p3 }
  0x73   : > { %1728 = vsyncadd (%p2363_p11), [#allocation8], 4294963200 }
  0x74   : > { %1730 = dma.done.wait (%p2364_p10), [#allocation11], 2176   ;;  %p2365_p7 = pmov %p2362_p3 }
  0x75   : > { %v1761_v0 = vmov 0.0   ;;  %vm1762_vm0 = vmmov 0   ;;  %v1985_v1 = vld [vmem:[#allocation9 + $0x78] sm:$0xff]  ;;  %v1987_v2 = vld [vmem:[#allocation9 + $0x70] sm:$0xff]  ;;  %v1991_v3 = vld [vmem:[#allocation9 + $0x68] sm:$0xff]  ;;  %vm508_vm1 = vcmask 64512  }
  0x76   : > { %1732 = vsyncadd (%p2365_p7), [#allocation11], 4294965120  ;;  %1254 = vmatprep.subr.mxu1 %v1761_v0  ;;  %1219 = vmatprep.subr.mxu0 %v1761_v0  ;;  %v1995_v4 = vld [vmem:[#allocation9 + $0x60] sm:$0xff]  ;;  %v1997_v5 = vld [vmem:[#allocation7 + $0x78] sm:$0xff]  ;;  %s2199_s29 = sld [smem:[#allocation3]]  ;;  %s2246_s17 = scalar_lea.vmem [#allocation13], %s1095_s16 }
  0x77   : > { %1286 = vmatprep.mubr.msk.f32.mxu1 %vm1762_vm0, %v1761_v0  ;;  %1251 = vmatprep.mubr.msk.f32.mxu0 %vm1762_vm0, %v1761_v0  ;;  %v2001_v6 = vld [vmem:[#allocation7 + $0x70] sm:$0xff]  ;;  %v2004_v7 = vld [vmem:[#allocation9 + $0x58] sm:$0xff]  ;;  %v2007_v8 = vld [vmem:[#allocation7 + $0x68] sm:$0xff]  ;;  %s2201_s7 = sld [smem:[#allocation3 + $0x1]]  ;;  %s973_s9 = sshll.u32 %s2246_s17, 4  ;;  %s2291_s9 = int_to_ptr.vmem [resolvable:$true] %s973_s9 }
  0x78   : > { %1255 = vmatpush3.msra.mxu1 %v1985_v1  ;;  %1220 = vmatpush3.msra.mxu0 %v1997_v5  ;;  %v2012_v9 = vld [vmem:[#allocation9 + $0x50] sm:$0xff]  ;;  %v2015_v10 = vld [vmem:[#allocation7 + $0x60] sm:$0xff]  ;;  %v2020_v11 = vld [vmem:[#allocation9 + $0x48] sm:$0xff]  ;;  %s1112_s12 = sshll.u32 %s1825_s0, 8  ;;  %s960_s21 = scalar_lea.sflag [#allocation6], %s1959_s23 }
  0x79   : > { %1256 = vmatprep.subr.mxu1 %v1761_v0  ;;  %1221 = vmatprep.subr.mxu0 %v1761_v0  ;;  %v2023_v12 = vld [vmem:[#allocation7 + $0x58] sm:$0xff]  ;;  %v2028_v13 = vld [vmem:[#allocation9 + $0x40] sm:$0xff]  ;;  %v2031_v14 = vld [vmem:[#allocation7 + $0x50] sm:$0xff]  ;;  %s2296_s8 = scalar_lea.hbm %s2346_s6, %s1112_s12  ;;  %s1677_s11 = scalar_lea.vmem %s2291_s9, 256 }
  0x7a   : > { %1257 = vmatpush3.msra.mxu1 %v1987_v2  ;;  %1222 = vmatpush3.msra.mxu0 %v2001_v6  ;;  %v2036_v15 = vld [vmem:[#allocation9 + $0x38] sm:$0xff]  ;;  %v2039_v16 = vld [vmem:[#allocation7 + $0x48] sm:$0xff]  ;;  %v2044_v17 = vld [vmem:[#allocation9 + $0x30] sm:$0xff]  ;;  %p1678_p12 = scmp.ne.s32.totalorder %s2291_s9, %s1677_s11  ;;  %p2366_p9 = scmp.ne.s32.totalorder %s2357_s19, 0 }
  0x7b   : > { %1258 = vmatprep.subr.mxu1 %v1761_v0  ;;  %1223 = vmatprep.subr.mxu0 %v1761_v0  ;;  %v2047_v18 = vld [vmem:[#allocation7 + $0x40] sm:$0xff]  ;;  %v2052_v19 = vld [vmem:[#allocation9 + $0x28] sm:$0xff]  ;;  %v2055_v20 = vld [vmem:[#allocation7 + $0x38] sm:$0xff]  ;;  %s1763_s0 = smov [#allocation13]  }
  0x7c   : > { %1259 = vmatpush3.msra.mxu1 %v1991_v3  ;;  %1224 = vmatpush3.msra.mxu0 %v2007_v8  ;;  %v2060_v21 = vld [vmem:[#allocation9 + $0x20] sm:$0xff]  ;;  %v314_v22 = vld [vmem:[#allocation7 + $0x30] sm:$0xff]  ;;  %v2066_v23 = vld [vmem:[#allocation9 + $0x18] sm:$0xff]  ;;  %p1679_p13 = pnand %p1678_p12, %p2366_p9  ;;  %s1681_s18 = sshll.u32 %s1763_s0, 4  ;;  %s1682_s18 = int_to_ptr.vmem [resolvable:$false] %s1681_s18 }
  0x7d   : > { %1260 = vmatprep.subr.mxu1 %v1761_v0  ;;  %1225 = vmatprep.subr.mxu0 %v1761_v0  ;;  %v313_v24 = vld [vmem:[#allocation7 + $0x28] sm:$0xff]  ;;  %v2071_v25 = vld [vmem:[#allocation9 + $0x10] sm:$0xff]  ;;  %v312_v26 = vld [vmem:[#allocation7 + $0x20] sm:$0xff]  ;;  %s1683_s10 = scalar_lea.vmem %s1682_s18, 512  ;;  %p1684_p1 = scmp.lt.s32.totalorder %s2291_s9, %s1682_s18 }
  0x7e   : > { %1261 = vmatpush3.msra.mxu1 %v1995_v4  ;;  %1226 = vmatpush3.msra.mxu0 %v2015_v10  ;;  %v2076_v27 = vld [vmem:[#allocation9 + $0x8] sm:$0xff]  ;;  %v311_v28 = vld [vmem:[#allocation7 + $0x18] sm:$0xff]  ;;  %v2081_v29 = vld [vmem:[#allocation9] sm:$0xff]  ;;  %p1680_p0 = pneg %p1679_p13  ;;  %p1685_p2 = scmp.lt.s32.totalorder %s1683_s10, %s1677_s11 }
  0x7f   : > { %1262 = vmatprep.subr.mxu1 %v1761_v0  ;;  %1227 = vmatprep.subr.mxu0 %v1761_v0  ;;  %v310_v30 = vld [vmem:[#allocation7 + $0x10] sm:$0xff]  ;;  %v309_v32 = vld [vmem:[#allocation7 + $0x8] sm:$0xff]  ;;  %v308_v33 = vld [vmem:[#allocation7] sm:$0xff] }
  0x80   : > { %1263 = vmatpush3.msra.mxu1 %v2004_v7  ;;  %1228 = vmatpush3.msra.mxu0 %v2023_v12  ;;  %v357_v31 = vld [vmem:[%s1965_s13] sm:$0xff]  ;;  %v2132_v50 = vld [vmem:[#allocation12 + $0x70] sm:$0xff]  ;;  %v2142_v52 = vld [vmem:[#allocation12 + $0x60] sm:$0xff]  ;;  %p1686_p4 = por %p1685_p2, %p1684_p1 }
  0x81   : > { %1264 = vmatprep.subr.mxu1 %v1761_v0  ;;  %1229 = vmatprep.subr.mxu0 %v1761_v0  ;;  %v2124_v48 = vld [vmem:[#allocation10] sm:$0xff]  ;;  %v2138_v51 = vld [vmem:[#allocation12 + $0x68] sm:$0xff]  ;;  %v2150_v54 = vld [vmem:[#allocation12 + $0x50] sm:$0xff] }
  0x82   : > { %1265 = vmatpush3.msra.mxu1 %v2012_v9  ;;  %1230 = vmatpush3.msra.mxu0 %v2031_v14  ;;  %v2126_v49 = vld [vmem:[#allocation12 + $0x78] sm:$0xff]  ;;  %v2154_v55 = vld [vmem:[#allocation12 + $0x48] sm:$0xff]  ;;  %v2158_v56 = vld [vmem:[#allocation12 + $0x40] sm:$0xff]  ;;  %p1687_p5 = pnand %p1686_p4, %p1680_p0 }
  0x83   : > { %1266 = vmatprep.subr.mxu1 %v1761_v0  ;;  %1231 = vmatprep.subr.mxu0 %v1761_v0  ;;  %v2146_v53 = vld [vmem:[#allocation12 + $0x58] sm:$0xff]  ;;  %v2166_v58 = vld [vmem:[#allocation12 + $0x30] sm:$0xff]  ;;  %v2170_v59 = vld [vmem:[#allocation12 + $0x28] sm:$0xff] }
  0x84   : > { %1267 = vmatpush3.msra.mxu1 %v2020_v11  ;;  %1232 = vmatpush3.msra.mxu0 %v2039_v16  ;;  %v2162_v57 = vld [vmem:[#allocation12 + $0x38] sm:$0xff]  ;;  %v2174_v60 = vld [vmem:[#allocation12 + $0x20] sm:$0xff]  ;;  %v2184_v62 = vld [vmem:[#allocation12 + $0x10] sm:$0xff] }
  0x85   : > { %1268 = vmatprep.subr.mxu1 %v1761_v0  ;;  %1233 = vmatprep.subr.mxu0 %v1761_v0  ;;  %v2178_v61 = vld [vmem:[#allocation12 + $0x18] sm:$0xff]  ;;  %v2188_v63 = vld [vmem:[#allocation12 + $0x8] sm:$0xff] }
  0x86   : > { %1269 = vmatpush3.msra.mxu1 %v2028_v13  ;;  %1234 = vmatpush3.msra.mxu0 %v2047_v18 }
  0x87   : > { %1270 = vmatprep.subr.mxu1 %v1761_v0  ;;  %1235 = vmatprep.subr.mxu0 %v1761_v0 }
  0x88   : > { %1271 = vmatpush3.msra.mxu1 %v2036_v15  ;;  %1236 = vmatpush3.msra.mxu0 %v2055_v20 }
  0x89   : > { %1272 = vmatprep.subr.mxu1 %v1761_v0  ;;  %1237 = vmatprep.subr.mxu0 %v1761_v0 }
  0x8a   : > { %1273 = vmatpush3.msra.mxu1 %v2044_v17  ;;  %1238 = vmatpush3.msra.mxu0 %v314_v22 }
  0x8b   : > { %1274 = vmatprep.subr.mxu1 %v1761_v0  ;;  %1239 = vmatprep.subr.mxu0 %v1761_v0 }
  0x8c   : > { %1275 = vmatpush3.msra.mxu1 %v2052_v19  ;;  %1240 = vmatpush3.msra.mxu0 %v313_v24 }
  0x8d   : > { %1276 = vmatprep.subr.mxu1 %v1761_v0  ;;  %1241 = vmatprep.subr.mxu0 %v1761_v0 }
  0x8e   : > { %1277 = vmatpush3.msra.mxu1 %v2060_v21  ;;  %1242 = vmatpush3.msra.mxu0 %v312_v26 }
  0x8f   : > { %1278 = vmatprep.subr.mxu1 %v1761_v0  ;;  %1243 = vmatprep.subr.mxu0 %v1761_v0 }
  0x90   : > { %1279 = vmatpush3.msra.mxu1 %v2066_v23  ;;  %1244 = vmatpush3.msra.mxu0 %v311_v28 }
  0x91   : > { %1280 = vmatprep.subr.mxu1 %v1761_v0  ;;  %1245 = vmatprep.subr.mxu0 %v1761_v0 }
  0x92   : > { %1281 = vmatpush3.msra.mxu1 %v2071_v25  ;;  %1246 = vmatpush3.msra.mxu0 %v310_v30 }
  0x93   : > { %1282 = vmatprep.subr.mxu1 %v1761_v0  ;;  %1247 = vmatprep.subr.mxu0 %v1761_v0 }
  0x94   : > { %1283 = vmatpush3.msra.mxu1 %v2076_v27  ;;  %1248 = vmatpush3.msra.mxu0 %v309_v32 }
  0x95   : > { %1284 = vmatprep.subr.mxu1 %v1761_v0  ;;  %1249 = vmatprep.subr.mxu0 %v1761_v0 }
  0x96   : > { %1285 = vmatpush3.msra.mxu1 %v2081_v29  ;;  %1250 = vmatpush3.msra.mxu0 %v308_v33 }
  0x97   : > { %1287 = vmatmul.mubr.f32.vlgmr.msra.gmra.mxu1 %v357_v31  ;;  %1289 = vmatprep.subr.mxu1 %v1761_v0 }
  0x98   : > { %1291 = vmatprep.mubr.msk.f32.mxu1 %vm1762_vm0, %v1761_v0  ;;  %1252 = vmatmul.mubr.f32.vlgmr.msra.gmra.mxu0 %v357_v31 }
  0x99   : > { %1329 = vmatprep.subr.mxu0 %v1761_v0  ;;  %1361 = vmatprep.mubr.msk.f32.mxu0 %vm1762_vm0, %v1761_v0 }
  0x9a   : > { %1330 = vmatpush3.msra.mxu0 %v1997_v5  ;;  %v2192_v5 = vld [vmem:[#allocation12] sm:$0xff] }
  0x9b   : > { %1331 = vmatprep.subr.mxu0 %v1761_v0 }
  0x9c   : > { %1332 = vmatpush3.msra.mxu0 %v2001_v6  ;;  %v1103_v6 = vld [vmem:[%s1965_s13 + $0x8] sm:$0xff] }
  0x9d   : > { %1333 = vmatprep.subr.mxu0 %v1761_v0 }
  0x9e   : > { %1334 = vmatpush3.msra.mxu0 %v2007_v8 }
  0x9f   : > { %1335 = vmatprep.subr.mxu0 %v1761_v0 }
  0xa0   : > { %1336 = vmatpush3.msra.mxu0 %v2015_v10  ;;  %v583_v10 = vstv %s2199_s29 }
  0xa1   : > { %1337 = vmatprep.subr.mxu0 %v1761_v0 }
  0xa2   : > { %1338 = vmatpush3.msra.mxu0 %v2023_v12  ;;  %v586_v12 = vstv %s2201_s7 }
  0xa3   : > { %1339 = vmatprep.subr.mxu0 %v1761_v0 }
  0xa4   : > { %1340 = vmatpush3.msra.mxu0 %v2031_v14 }
  0xa5   : > { %1341 = vmatprep.subr.mxu0 %v1761_v0 }
  0xa6   : > { %1342 = vmatpush3.msra.mxu0 %v2039_v16 }
  0xa7   : > { %1343 = vmatprep.subr.mxu0 %v1761_v0 }
  0xa8   : > { %1344 = vmatpush3.msra.mxu0 %v2047_v18 }
  0xa9   : > { %1345 = vmatprep.subr.mxu0 %v1761_v0 }
  0xaa   : > { %1346 = vmatpush3.msra.mxu0 %v2055_v20 }
  0xab   : > { %1347 = vmatprep.subr.mxu0 %v1761_v0 }
  0xac   : > { %1348 = vmatpush3.msra.mxu0 %v314_v22 }
  0xad   : > { %1349 = vmatprep.subr.mxu0 %v1761_v0 }
  0xae   : > { %1350 = vmatpush3.msra.mxu0 %v313_v24 }
  0xaf   : > { %1351 = vmatprep.subr.mxu0 %v1761_v0 }
  0xb0   : > { %1352 = vmatpush3.msra.mxu0 %v312_v26 }
  0xb1   : > { %1353 = vmatprep.subr.mxu0 %v1761_v0 }
  0xb2   : > { %1354 = vmatpush3.msra.mxu0 %v311_v28 }
  0xb3   : > { %1355 = vmatprep.subr.mxu0 %v1761_v0 }
  0xb4   : > { %1356 = vmatpush3.msra.mxu0 %v310_v30 }
  0xb5   : > { %1357 = vmatprep.subr.mxu0 %v1761_v0 }
  0xb6   : > { %1358 = vmatpush3.msra.mxu0 %v309_v32 }
  0xb7   : > { %1359 = vmatprep.subr.mxu0 %v1761_v0 }
  0xb8   : > { %1360 = vmatpush3.msra.mxu0 %v308_v33 }
  0xb9   : > { %1399 = vmatprep.subr.mxu0 %v1761_v0  ;;  %1362 = vmatmul.mubr.f32.vlgmr.msra.gmra.mxu0 %v1103_v6 }
  0xba   : > { %1401 = vmatprep.mubr.msk.f32.mxu0 %vm1762_vm0, %v1761_v0 }
 0x157   : > { %v494_v34 = vpop.f32.mrf.mxu1 }
 0x158   : > { %v498_v35 = vmul.f32 %v494_v34, %v494_v34  ;;  %v424_v38 = vpop.f32.mrf.mxu0 }
 0x159   : > { %v1288_v36 = vpop.f32.mrf.mxu1 }
 0x15a   : > { %v499_v37 = vmul.f32 %v498_v35, %v494_v34  ;;  %v1253_v40 = vpop.f32.mrf.mxu0 }
 0x15c   : > { %v500_v39 = vmul.f32 0.044715, %v499_v37 }
 0x15e   : > { %v501_v41 = vadd.f32 %v500_v39, %v494_v34 }
 0x160   : > { %v502_v42 = vmul.f32 0.7978846, %v501_v41 }
 0x162   : > { %1533 = vtanh.f32 %v502_v42 }
 0x16f   : > { %v1534_v43 = vpop.eup %1533 }
 0x170   : > { %v504_v44 = vadd.f32 1.0, %v1534_v43 }
 0x172   : > { %v505_v45 = vmul.f32 0.5, %v504_v44 }
 0x174   : > { %v506_v46 = vmul.f32 %v505_v45, %v494_v34 }
 0x176   : > { %v2122_v47 = vmul.f32 %v506_v46, %v424_v38 }
 0x178   : > { %1290 = vmatpush3.msra.mxu1 %v2122_v47 }
 0x179   : > { %1292 = vmatmul.mubr.msk.f32.vlgmr.msra.gmra.mxu1 %vm508_vm1, %v2124_v48  ;;  %1294 = vmatprep.subr.mxu1 %v1761_v0 }
 0x17a   : > { %1295 = vmatpush3.msra.mxu1 %v2126_v49  ;;  %1326 = vmatprep.mubr.msk.f32.mxu1 %vm1762_vm0, %v1761_v0 }
 0x17b   : > { %1296 = vmatprep.subr.mxu1 %v1761_v0 }
 0x17c   : > { %1297 = vmatpush3.msra.mxu1 %v2132_v50 }
 0x17d   : > { %1298 = vmatprep.subr.mxu1 %v1761_v0 }
 0x17e   : > { %1299 = vmatpush3.msra.mxu1 %v2138_v51 }
 0x17f   : > { %1300 = vmatprep.subr.mxu1 %v1761_v0 }
 0x180   : > { %1301 = vmatpush3.msra.mxu1 %v2142_v52 }
 0x181   : > { %1302 = vmatprep.subr.mxu1 %v1761_v0 }
 0x182   : > { %1303 = vmatpush3.msra.mxu1 %v2146_v53 }
 0x183   : > { %1304 = vmatprep.subr.mxu1 %v1761_v0 }
 0x184   : > { %1305 = vmatpush3.msra.mxu1 %v2150_v54 }
 0x185   : > { %1306 = vmatprep.subr.mxu1 %v1761_v0 }
 0x186   : > { %1307 = vmatpush3.msra.mxu1 %v2154_v55 }
 0x187   : > { %1308 = vmatprep.subr.mxu1 %v1761_v0 }
 0x188   : > { %1309 = vmatpush3.msra.mxu1 %v2158_v56 }
 0x189   : > { %1310 = vmatprep.subr.mxu1 %v1761_v0 }
 0x18a   : > { %1311 = vmatpush3.msra.mxu1 %v2162_v57 }
 0x18b   : > { %1312 = vmatprep.subr.mxu1 %v1761_v0 }
 0x18c   : > { %1313 = vmatpush3.msra.mxu1 %v2166_v58 }
 0x18d   : > { %1314 = vmatprep.subr.mxu1 %v1761_v0 }
 0x18e   : > { %1315 = vmatpush3.msra.mxu1 %v2170_v59 }
 0x18f   : > { %1316 = vmatprep.subr.mxu1 %v1761_v0 }
 0x190   : > { %1317 = vmatpush3.msra.mxu1 %v2174_v60 }
 0x191   : > { %1318 = vmatprep.subr.mxu1 %v1761_v0 }
 0x192   : > { %1319 = vmatpush3.msra.mxu1 %v2178_v61 }
 0x193   : > { %1320 = vmatprep.subr.mxu1 %v1761_v0 }
 0x194   : > { %1321 = vmatpush3.msra.mxu1 %v2184_v62 }
 0x195   : > { %1322 = vmatprep.subr.mxu1 %v1761_v0 }
 0x196   : > { %1323 = vmatpush3.msra.mxu1 %v2188_v63 }
 0x197   : > { %1324 = vmatprep.subr.mxu1 %v1761_v0 }
 0x198   : > { %1325 = vmatpush3.msra.mxu1 %v2192_v5 }
 0x199   : > { %1364 = vmatprep.subr.mxu1 %v1761_v0 }
 0x239   : > { %v578_v8 = vpop.f32.mrf.mxu1 }
 0x23a   : > { %v582_v14 = vmul.f32 %v578_v8, %v2122_v47  ;;  %v585_v16 = vsub.f32 %v2122_v47, %v578_v8 }
 0x23b   : > { %v1293_v18 = vpop.f32.mrf.mxu1 }
 0x23c   : > { %v584_v20 = vmul.f32 %v583_v10, %v582_v14  ;;  %v587_v22 = vmul.f32 %v586_v12, %v585_v16 }
 0x23e   : > { %v588_v24 = vadd.f32 %v587_v22, %v584_v20 }
 0x240   : > { %1327 = vmatmul.mubr.f32.vlgmr.msra.gmra.mxu1 %v588_v24 }
 0x241   : > { %1365 = vmatpush3.msra.mxu1 %v1985_v1  ;;  %1396 = vmatprep.mubr.msk.f32.mxu1 %vm1762_vm0, %v1761_v0  ;;  %v728_v1 = vpop.f32.mrf.mxu0 }
 0x242   : > { %1366 = vmatprep.subr.mxu1 %v1761_v0 }
 0x243   : > { %1367 = vmatpush3.msra.mxu1 %v1987_v2  ;;  %v1363_v2 = vpop.f32.mrf.mxu0 }
 0x244   : > { %1368 = vmatprep.subr.mxu1 %v1761_v0 }
 0x245   : > { %1369 = vmatpush3.msra.mxu1 %v1991_v3 }
 0x246   : > { %1370 = vmatprep.subr.mxu1 %v1761_v0 }
 0x247   : > { %1371 = vmatpush3.msra.mxu1 %v1995_v4 }
 0x248   : > { %1372 = vmatprep.subr.mxu1 %v1761_v0 }
 0x249   : > { %1373 = vmatpush3.msra.mxu1 %v2004_v7 }
 0x24a   : > { %1374 = vmatprep.subr.mxu1 %v1761_v0 }
 0x24b   : > { %1375 = vmatpush3.msra.mxu1 %v2012_v9 }
 0x24c   : > { %1376 = vmatprep.subr.mxu1 %v1761_v0 }
 0x24d   : > { %1377 = vmatpush3.msra.mxu1 %v2020_v11 }
 0x24e   : > { %1378 = vmatprep.subr.mxu1 %v1761_v0 }
 0x24f   : > { %1379 = vmatpush3.msra.mxu1 %v2028_v13 }
 0x250   : > { %1380 = vmatprep.subr.mxu1 %v1761_v0 }
 0x251   : > { %1381 = vmatpush3.msra.mxu1 %v2036_v15 }
 0x252   : > { %1382 = vmatprep.subr.mxu1 %v1761_v0 }
 0x253   : > { %1383 = vmatpush3.msra.mxu1 %v2044_v17 }
 0x254   : > { %1384 = vmatprep.subr.mxu1 %v1761_v0 }
 0x255   : > { %1385 = vmatpush3.msra.mxu1 %v2052_v19 }
 0x256   : > { %1386 = vmatprep.subr.mxu1 %v1761_v0 }
 0x257   : > { %1387 = vmatpush3.msra.mxu1 %v2060_v21 }
 0x258   : > { %1388 = vmatprep.subr.mxu1 %v1761_v0 }
 0x259   : > { %1389 = vmatpush3.msra.mxu1 %v2066_v23 }
 0x25a   : > { %1390 = vmatprep.subr.mxu1 %v1761_v0 }
 0x25b   : > { %1391 = vmatpush3.msra.mxu1 %v2071_v25 }
 0x25c   : > { %1392 = vmatprep.subr.mxu1 %v1761_v0 }
 0x25d   : > { %1393 = vmatpush3.msra.mxu1 %v2076_v27 }
 0x25e   : > { %1394 = vmatprep.subr.mxu1 %v1761_v0 }
 0x25f   : > { %1395 = vmatpush3.msra.mxu1 %v2081_v29 }
 0x260   : > { %1397 = vmatmul.mubr.f32.vlgmr.msra.gmra.mxu1 %v1103_v6 }
 0x300   : > { %v655_v3 = vpop.f32.mrf.mxu1 }
 0x301   : > { %659 = vst [vmem:[%s2246_s17] sm:$0xff] %v655_v3 }
 0x302   : > { %v1328_v4 = vpop.f32.mrf.mxu1 }
 0x320   : > { %v798_v7 = vpop.f32.mrf.mxu1 }
 0x321   : > { %v802_v9 = vmul.f32 %v798_v7, %v798_v7 }
 0x322   : > { %v1398_v11 = vpop.f32.mrf.mxu1 }
 0x323   : > { %v803_v13 = vmul.f32 %v802_v9, %v798_v7 }
 0x325   : > { %v804_v15 = vmul.f32 0.044715, %v803_v13 }
 0x327   : > { %v805_v17 = vadd.f32 %v804_v15, %v798_v7 }
 0x329   : > { %v806_v19 = vmul.f32 0.7978846, %v805_v17 }
 0x32b   : > { %1535 = vtanh.f32 %v806_v19 }
 0x338   : > { %v1536_v21 = vpop.eup %1535 }
 0x339   : > { %v808_v23 = vadd.f32 1.0, %v1536_v21 }
 0x33b   : > { %v809_v25 = vmul.f32 0.5, %v808_v23 }
 0x33d   : > { %v810_v26 = vmul.f32 %v809_v25, %v798_v7 }
 0x33f   : > { %v811_v27 = vmul.f32 %v810_v26, %v728_v1 }
 0x341   : > { %1400 = vmatpush3.msra.mxu0 %v811_v27 }
 0x342   : > { %1402 = vmatmul.mubr.msk.f32.vlgmr.msra.gmra.mxu0 %vm508_vm1, %v2124_v48  ;;  %1404 = vmatprep.subr.mxu0 %v1761_v0 }
 0x343   : > { %1405 = vmatpush3.msra.mxu0 %v2126_v49  ;;  %1436 = vmatprep.mubr.msk.f32.mxu0 %vm1762_vm0, %v1761_v0 }
 0x344   : > { %1406 = vmatprep.subr.mxu0 %v1761_v0 }
 0x345   : > { %1407 = vmatpush3.msra.mxu0 %v2132_v50 }
 0x346   : > { %1408 = vmatprep.subr.mxu0 %v1761_v0 }
 0x347   : > { %1409 = vmatpush3.msra.mxu0 %v2138_v51 }
 0x348   : > { %1410 = vmatprep.subr.mxu0 %v1761_v0 }
 0x349   : > { %1411 = vmatpush3.msra.mxu0 %v2142_v52 }
 0x34a   : > { %1412 = vmatprep.subr.mxu0 %v1761_v0 }
 0x34b   : > { %1413 = vmatpush3.msra.mxu0 %v2146_v53 }
 0x34c   : > { %1414 = vmatprep.subr.mxu0 %v1761_v0 }
 0x34d   : > { %1415 = vmatpush3.msra.mxu0 %v2150_v54 }
 0x34e   : > { %1416 = vmatprep.subr.mxu0 %v1761_v0 }
 0x34f   : > { %1417 = vmatpush3.msra.mxu0 %v2154_v55 }
 0x350   : > { %1418 = vmatprep.subr.mxu0 %v1761_v0 }
 0x351   : > { %1419 = vmatpush3.msra.mxu0 %v2158_v56 }
 0x352   : > { %1420 = vmatprep.subr.mxu0 %v1761_v0 }
 0x353   : > { %1421 = vmatpush3.msra.mxu0 %v2162_v57 }
 0x354   : > { %1422 = vmatprep.subr.mxu0 %v1761_v0 }
 0x355   : > { %1423 = vmatpush3.msra.mxu0 %v2166_v58 }
 0x356   : > { %1424 = vmatprep.subr.mxu0 %v1761_v0 }
 0x357   : > { %1425 = vmatpush3.msra.mxu0 %v2170_v59 }
 0x358   : > { %1426 = vmatprep.subr.mxu0 %v1761_v0 }
 0x359   : > { %1427 = vmatpush3.msra.mxu0 %v2174_v60 }
 0x35a   : > { %1428 = vmatprep.subr.mxu0 %v1761_v0 }
 0x35b   : > { %1429 = vmatpush3.msra.mxu0 %v2178_v61 }
 0x35c   : > { %1430 = vmatprep.subr.mxu0 %v1761_v0 }
 0x35d   : > { %1431 = vmatpush3.msra.mxu0 %v2184_v62 }
 0x35e   : > { %1432 = vmatprep.subr.mxu0 %v1761_v0 }
 0x35f   : > { %1433 = vmatpush3.msra.mxu0 %v2188_v63 }
 0x360   : > { %1434 = vmatprep.subr.mxu0 %v1761_v0 }
 0x361   : > { %1435 = vmatpush3.msra.mxu0 %v2192_v5 }
 0x402   : > { %v878_v28 = vpop.f32.mrf.mxu0 }
 0x403   : > { %v882_v29 = vmul.f32 %v878_v28, %v811_v27  ;;  %v884_v30 = vsub.f32 %v811_v27, %v878_v28 }
 0x404   : > { %v1403_v31 = vpop.f32.mrf.mxu0 }
 0x405   : > { %v883_v32 = vmul.f32 %v882_v29, %v583_v10  ;;  %v885_v33 = vmul.f32 %v884_v30, %v586_v12 }
 0x407   : > { %v886_v34 = vadd.f32 %v885_v33, %v883_v32 }
 0x409   : > { %1437 = vmatmul.mubr.f32.vlgmr.msra.gmra.mxu0 %v886_v34 }
 0x4c9   : > { %v953_v0 = vpop.f32.mrf.mxu0 }
 0x4ca   : > { %1105 = vst [vmem:[%s2246_s17 + $0x8] sm:$0xff] %v953_v0 }
 0x4cb   : > { %v1438_v35 = vpop.f32.mrf.mxu0 }
 0x4cc   : > { %1690 = shalt.err (!%p1687_p5)
}
 0x4cd   : > { %s1691_s16 = scalar_lea.hbm %s2296_s8, 256  ;;  %s1695_s29 = scalar_lea.hbm %s2346_s6, 512 }
 0x4ce   : > { %p1692_p6 = scmp.ne.s32.totalorder %s2296_s8, %s1691_s16  ;;  %p1696_p11 = scmp.lt.s32.totalorder %s2296_s8, %s2346_s6 }
 0x4cf   : > { %p1697_p10 = scmp.lt.s32.totalorder %s1695_s29, %s1691_s16 }
 0x4d0   : > { %p1693_p8 = pnand %p1692_p6, %p2366_p9 }
 0x4d1   : > { %p1698_p7 = por %p1697_p10, %p1696_p11 }
 0x4d2   : > { %p1694_p3 = pneg %p1693_p8 }
 0x4d4   : > { %p1699_p12 = pnand %p1698_p7, %p1694_p3 }
 0x4d6   : > { %1702 = shalt.err (!%p1699_p12)
}
 0x4d7   : > { %s1764_s12 = smov 128   ;;  %s1765_s14 = smov 8  }
 0x4d8   : > { %1457 = dma.vmem_to_hbm [thread:$0]  (%p2366_p9), %s2291_s9, 256, %s2296_s8, %s960_s21, %s1764_s12, %s1764_s12, %s1765_s14  }
 0x4d9 PF: > { %s988_s28 = sand.u32 1, %s1739_s24   ;;  %p2367_p13 = scmp.ne.s32.totalorder %s2353_s30, 0 }
 0x4da   : > { %p2368_p0 = scmp.ge.s32.totalorder %s1751_s27, 2  ;;  %s989_s11 = scalar_lea.sflag [#allocation6], %s988_s28 }
 0x4dc   : > { %p1477_p1 = pnand %p2368_p0, %p2367_p13 }
 0x4de   : > { %p1478_p2 = pneg %p1477_p1 }
 0x4e0   : > { %1734 = dma.done.wait (%p1478_p2), %s989_s11, 256  }
 0x4e1   : > { %1736 = vsyncadd (%p1478_p2), %s989_s11, 4294967040  ;;  %p25_p4 = scmp.ge.s32.totalorder %s1901_s15, 4   ;;  %s2369_s24 = smov %s1743_s25 }
 0x4e2   : > { %s2370_s25 = smov %s1747_s26  ;;  %s2371_s26 = smov %s1917_s20 }
 0x4e3   : > { %s2372_s27 = smov %s1901_s15  ;;  %27 = sbr.rel (!%p25_p4) target bundleno = 12 (0xc), region = 103 }
 0x4e8   :  { %994 = vsyncpa [#allocation5], 1 }
 0x4e9   :  { %996 = vsyncpa [#allocation5 + $0x1], 1 }
 0x4ea   :  { %997 = vsyncpa [#allocation8], 1 }
 0x4eb   :  { %998 = vsyncpa [#allocation11], 1 }
 0x4ec   :  { %999 = vsyncpa [#allocation6], 1 }
 0x4ed   :  { %1001 = vsyncpa [#allocation6 + $0x1], 1 }

// kernel: tpu_custom_call.1
= control target key start
LH: loop header
LB: loop body
LE: loop exit
PB: predicated region body
PF: predicated region fallthrough
CT: control target
= control target key end

     0   :  { %s1753_s21 = smov [#allocation3]   ;;  %s2340_s0 = inlined_call_operand.hbm [shape: f32[2], index: 0, kind: input, shape index: {}]   ;;  %s2341_s1 = inlined_call_operand.hbm [shape: f32[4,8,128], index: 1, kind: input, shape index: {}]   ;;  %s2342_s2 = inlined_call_operand.hbm [shape: f32[128,128], index: 2, kind: input, shape index: {}]   ;;  %s2343_s3 = inlined_call_operand.hbm [shape: f32[128,128], index: 3, kind: input, shape index: {}]   ;;  %s2344_s4 = inlined_call_operand.hbm [shape: f32[8,8], index: 4, kind: input, shape index: {}]   ;;  %s2345_s5 = inlined_call_operand.hbm [shape: f32[128,128], index: 5, kind: input, shape index: {}]   ;;  %s2346_s6 = inlined_call_operand.hbm [shape: f32[4,8,128], index: 6, kind: output, shape index: {}]  }
   0x1   :  { %12 = dma.hbm_to_smem %s2340_s0, 16, %s1753_s21, [#allocation2] }
   0x2   :  { %1719 = dma.done.wait [#allocation2], 16 }
   0x3   :  { %1720 = vsyncadd [#allocation2], 4294967280 }
   0x4   :  { %14 = sfence }
   0x5   :  { %15 = vsyncpa [#allocation5], 0 }
   0x6   :  { %17 = vsyncpa [#allocation5 + $0x1], 0 }
   0x7   :  { %18 = vsyncpa [#allocation8], 0 }
   0x8   :  { %19 = vsyncpa [#allocation11], 0 }
   0x9   :  { %20 = vsyncpa [#allocation6], 0 }
   0xa   :  { %22 = vsyncpa [#allocation6 + $0x1], 0  ;;  %s1804_s24 = smov 0   ;;  %s1806_s25 = smov 0  }
   0xb   :  { %s1808_s26 = smov 0   ;;  %s1810_s27 = smov 0  }
   0xc LB: > { %s1825_s0 = sadd.s32 4294967295, %s1751_s27   ;;  %s1084_s28 = sadd.s32 4294967294, %s1751_s27   ;;  %s1751_s27 = sphi %s1810_s27, %s2372_s27   ;;  %s1747_s26 = sphi %s1808_s26, %s2371_s26   ;;  %s1743_s25 = sphi %s1806_s25, %s2370_s25   ;;  %s1739_s24 = sphi %s1804_s24, %s2369_s24  }
   0xd   : > { %p48_p0 = scmp.ne.s32.totalorder %s1743_s25, %s1739_s24  ;;  %p2347_p1 = scmp.eq.s32.totalorder %s1825_s0, 0 }
   0xe   : > { %p162_p3 = scmp.eq.s32.totalorder %s1084_s28, 1  ;;  %p1085_p5 = scmp.ge.s32.totalorder %s1751_s27, 1 }
   0xf   : > { %p1834_p4 = por %p2347_p1, %p48_p0  ;;  %p169_p7 = scmp.lt.s32.totalorder %s1751_s27, 3 }
  0x10   : > { %p1839_p6 = por %p162_p3, %p48_p0  ;;  %s1754_s8 = smov [#allocation7]  }
  0x11   : > { %s2352_s29 = scalar_select %p1834_p4, 1, 0 }
  0x12   : > { %s2353_s30 = scalar_select %p1839_p6, 1, 0 }
  0x13   : > { %p1844_p8 = pnand %p1085_p5, %p169_p7  ;;  %s181_s9 = sshll.u32 %s1754_s8, 4  ;;  %s182_s9 = int_to_ptr.vmem [resolvable:$true] %s181_s9 }
  0x14   : > { %s1755_s11 = smov [#allocation10]   ;;  %s1756_s13 = smov [#allocation9]  }
  0x15   : > { %s2354_s7 = scalar_select %p1844_p8, 1, 0 }
  0x16   : > { %p1459_p9 = pneg %p1844_p8  ;;  %s208_s12 = sshll.u32 %s1755_s11, 4  ;;  %s209_s12 = int_to_ptr.vmem [resolvable:$true] %s208_s12 }
  0x17   : > { %s194_s14 = sshll.u32 %s1756_s13, 4  ;;  %s1556_s15 = scalar_lea.vmem %s182_s9, 2048  ;;  %s195_s14 = int_to_ptr.vmem [resolvable:$true] %s194_s14 }
  0x18   : > { %p1853_p11 = pnand %p1459_p9, %p2347_p1  ;;  %p1557_p13 = scmp.ne.s32.totalorder %s182_s9, %s1556_s15 }
  0x19   : > { %p1564_p5 = scmp.lt.s32.totalorder %s182_s9, %s182_s9  ;;  %p1565_p7 = scmp.lt.s32.totalorder %s1556_s15, %s1556_s15 }
  0x1a   : > { %p1547_p12 = pneg %p1853_p11 }
  0x1b   : > { %p1566_p9 = por %p1565_p7, %p1564_p5 }
  0x1c   : > { %p1559_p0 = pnand %p1557_p13, %p1547_p12 }
  0x1e   : > { %p1560_p3 = pneg %p1559_p0 }
  0x20   : > { %p1567_p10 = pnand %p1566_p9, %p1560_p3 }
  0x22   : > { %1570 = shalt.err (!%p1567_p10)
}
  0x23   : > { %s2349_s16 = smov 128   ;;  %s1758_s17 = smov 8  }
  0x24   : > { %1462 = dma.hbm_to_vmem [thread:$0]  (!%p1853_p11), %s2342_s2, 2048, %s182_s9, [#allocation8], %s2349_s16, %s2349_s16, %s1758_s17  }
  0x25   : > { %s1582_s20 = scalar_lea.vmem %s209_s12, 128  ;;  %p1590_p3 = scmp.lt.s32.totalorder %s209_s12, %s209_s12 }
  0x26   : > { %p1583_p13 = scmp.ne.s32.totalorder %s209_s12, %s1582_s20  ;;  %p1591_p10 = scmp.lt.s32.totalorder %s1582_s20, %s1582_s20 }
  0x28   : > { %p1585_p0 = pnand %p1583_p13, %p1547_p12  ;;  %p1592_p7 = por %p1591_p10, %p1590_p3 }
  0x2a   : > { %p1586_p5 = pneg %p1585_p0 }
  0x2c   : > { %p1593_p9 = pnand %p1592_p7, %p1586_p5 }
  0x2e   : > { %1596 = shalt.err (!%p1593_p9)
}
  0x2f   : > { %1468 = dma.hbm_to_vmem [thread:$0]  (!%p1853_p11), %s2344_s4, 128, %s209_s12, [#allocation11]  }
  0x30   : > { %s1608_s23 = scalar_lea.vmem %s195_s14, 2048  ;;  %p1616_p0 = scmp.lt.s32.totalorder %s195_s14, %s195_s14 }
  0x31   : > { %p1609_p1 = scmp.ne.s32.totalorder %s195_s14, %s1608_s23  ;;  %p1617_p6 = scmp.lt.s32.totalorder %s1608_s23, %s1608_s23 }
  0x33   : > { %p1611_p2 = pnand %p1609_p1, %p1547_p12  ;;  %p1618_p4 = por %p1617_p6, %p1616_p0 }
  0x35   : > { %p1612_p13 = pneg %p1611_p2 }
  0x37   : > { %p1619_p3 = pnand %p1618_p4, %p1612_p13 }
  0x39   : > { %1622 = shalt.err (!%p1619_p3)
}
  0x3a   : > { %1465 = dma.hbm_to_vmem [thread:$0]  (!%p1853_p11), %s2343_s3, 2048, %s195_s14, [#allocation8], %s2349_s16, %s2349_s16, %s1758_s17  }
  0x3b   : > { %s1759_s9 = smov [#allocation12]  }
  0x3c   : > { %s218_s11 = sshll.u32 %s1759_s9, 4  ;;  %s219_s11 = int_to_ptr.vmem [resolvable:$true] %s218_s11 }
  0x3d   : > { %s1634_s12 = scalar_lea.vmem %s219_s11, 2048  ;;  %p1642_p6 = scmp.lt.s32.totalorder %s219_s11, %s219_s11 }
  0x3e   : > { %p1635_p1 = scmp.ne.s32.totalorder %s219_s11, %s1634_s12  ;;  %p1643_p5 = scmp.lt.s32.totalorder %s1634_s12, %s1634_s12 }
  0x40   : > { %p1637_p2 = pnand %p1635_p1, %p1547_p12  ;;  %p1644_p10 = por %p1643_p5, %p1642_p6 }
  0x42   : > { %p1638_p4 = pneg %p1637_p2 }
  0x44   : > { %p1645_p7 = pnand %p1644_p10, %p1638_p4 }
  0x46   : > { %1648 = shalt.err (!%p1645_p7)
}
  0x47   : > { %1471 = dma.hbm_to_vmem [thread:$0]  (!%p1853_p11), %s2345_s5, 2048, %s219_s11, [#allocation11], %s2349_s16, %s2349_s16, %s1758_s17  }
  0x48   : > { %s1901_s15 = sadd.s32 1, %s1751_s27   ;;  %s35_s10 = sadd.s32 1, %s1747_s26 }
  0x49   : > { %s32_s18 = ssub.s32 %s1751_s27, %s1901_s15  ;;  %p42_p12 = scmp.ne.s32.totalorder %s1747_s26, %s1743_s25 }
  0x4a   : > { %p33_p9 = scmp.eq.s32.totalorder %s32_s18, 0  ;;  %p43_p13 = scmp.eq.s32.totalorder %s1751_s27, 0 }
  0x4b   : > { %p2356_p0 = scmp.eq.s32.totalorder %s1825_s0, 1  ;;  %p1484_p1 = scmp.lt.s32.totalorder %s1751_s27, 2 }
  0x4c   : > { %s1917_s20 = scalar_select %p33_p9, %s1747_s26, %s35_s10  }
  0x4d   : > { %p1911_p3 = por %p2356_p0, %p42_p12  ;;  %p44_p2 = por %p43_p13, %p42_p12 }
  0x4e   : > { %s232_s21 = sand.u32 1, %s1747_s26   ;;  %s1111_s23 = sshll.u32 %s1751_s27, 8 }
  0x4f   : > { %s2357_s19 = scalar_select %p1911_p3, 1, 0 }
  0x50   : > { %s1091_s22 = sshll.u32 %s232_s21, 4  ;;  %s1924_s9 = scalar_lea.hbm %s2341_s1, %s1111_s23 }
  0x51   : > { %s236_s11 = scalar_lea.vmem [#allocation4], %s1091_s22  ;;  %p1928_p11 = pnand %p1484_p1, %p44_p2 }
  0x52   : > { %s243_s12 = sshll.u32 %s236_s11, 4  ;;  %s1932_s14 = scalar_lea.sflag [#allocation5], %s232_s21  ;;  %s1926_s12 = int_to_ptr.vmem [resolvable:$true] %s243_s12 }
  0x53   : > { %s1649_s10 = scalar_lea.hbm %s1924_s9, 256  ;;  %p1651_p6 = pneg %p1928_p11 }
  0x54   : > { %p1650_p4 = scmp.ne.s32.totalorder %s1924_s9, %s1649_s10  ;;  %s1654_s22 = scalar_lea.hbm %s2341_s1, 512 }
  0x55   : > { %p1655_p7 = scmp.lt.s32.totalorder %s1924_s9, %s2341_s1  ;;  %p1656_p12 = scmp.lt.s32.totalorder %s1654_s22, %s1649_s10 }
  0x56   : > { %p1652_p5 = pnand %p1651_p6, %p1650_p4 }
  0x57   : > { %p1657_p9 = por %p1656_p12, %p1655_p7 }
  0x58   : > { %p1653_p10 = pneg %p1652_p5 }
  0x5a   : > { %p1658_p13 = pnand %p1657_p9, %p1653_p10 }
  0x5c   : > { %1661 = shalt.err (!%p1658_p13)
}
  0x5d   : > { %s1662_s21 = scalar_lea.vmem %s1926_s12, 256  ;;  %s1760_s11 = smov [#allocation4]  }
  0x5e   : > { %p1663_p0 = scmp.ne.s32.totalorder %s1926_s12, %s1662_s21  ;;  %s1667_s16 = sshll.u32 %s1760_s11, 4  ;;  %s1668_s16 = int_to_ptr.vmem [resolvable:$false] %s1667_s16 }
  0x5f   : > { %s1669_s18 = scalar_lea.vmem %s1668_s16, 512  ;;  %p1670_p4 = scmp.lt.s32.totalorder %s1926_s12, %s1668_s16 }
  0x60   : > { %p1665_p1 = pnand %p1663_p0, %p1651_p6  ;;  %p1671_p5 = scmp.lt.s32.totalorder %s1669_s18, %s1662_s21 }
  0x62   : > { %p1666_p2 = pneg %p1665_p1  ;;  %p1672_p3 = por %p1671_p5, %p1670_p4 }
  0x64   : > { %p1673_p8 = pnand %p1672_p3, %p1666_p2 }
  0x66   : > { %1676 = shalt.err (!%p1673_p8)
}
  0x67   : > { %s2359_s10 = smov 128   ;;  %p2360_p6 = scmp.ne.s32.totalorder %s2354_s7, 0 }
  0x68   : > { %1475 = dma.hbm_to_vmem [thread:$0]  (!%p1928_p11), %s1924_s9, 256, %s1926_s12, %s1932_s14, %s2359_s10, %s2359_s10, %s1758_s17  }
  0x69   : > { %255 = sbr.rel (%p2360_p6) target bundleno = 1241 (0x4d9), region = 40  ;;  %s1959_s23 = sand.u32 (!%p2360_p6), 1, %s1743_s25  }
  0x6a   : > { %s1095_s16 = sshll.u32 (!%p2360_p6), %s1959_s23, 4  ;;  %s258_s22 = scalar_lea.sflag (!%p2360_p6), [#allocation5], %s1959_s23 }
  0x6b   : > { %s1965_s13 = scalar_lea.vmem (!%p2360_p6), [#allocation4], %s1095_s16  ;;  %p2361_p8 = scmp.ne.s32.totalorder (!%p2360_p6), %s2352_s29, 0 }
  0x6e   : > { %1722 = dma.done.wait (%p2361_p8), %s258_s22, 256  }
  0x6f   : > { %1724 = vsyncadd (%p2361_p8), %s258_s22, 4294967040  ;;  %p2362_p3 = scmp.eq.s32.totalorder %s1825_s0, 0 }
  0x71   : > { %1726 = dma.done.wait (%p2362_p3), [#allocation8], 4096   ;;  %p2363_p11 = pmov %p2362_p3 }
  0x72   : > { %p2364_p10 = pmov %p2362_p3 }
  0x73   : > { %1728 = vsyncadd (%p2363_p11), [#allocation8], 4294963200 }
  0x74   : > { %1730 = dma.done.wait (%p2364_p10), [#allocation11], 2176   ;;  %p2365_p7 = pmov %p2362_p3 }
  0x75   : > { %v1761_v0 = vmov 0.0   ;;  %vm1762_vm0 = vmmov 0   ;;  %v1985_v1 = vld [vmem:[#allocation9 + $0x78] sm:$0xff]  ;;  %v1987_v2 = vld [vmem:[#allocation9 + $0x70] sm:$0xff]  ;;  %v1991_v3 = vld [vmem:[#allocation9 + $0x68] sm:$0xff]  ;;  %vm508_vm1 = vcmask 64512  }
  0x76   : > { %1732 = vsyncadd (%p2365_p7), [#allocation11], 4294965120  ;;  %1254 = vmatprep.subr.mxu1 %v1761_v0  ;;  %1219 = vmatprep.subr.mxu0 %v1761_v0  ;;  %v1995_v4 = vld [vmem:[#allocation9 + $0x60] sm:$0xff]  ;;  %v1997_v5 = vld [vmem:[#allocation7 + $0x78] sm:$0xff]  ;;  %s2199_s29 = sld [smem:[#allocation3]]  ;;  %s2246_s17 = scalar_lea.vmem [#allocation13], %s1095_s16 }
  0x77   : > { %1286 = vmatprep.mubr.msk.f32.mxu1 %vm1762_vm0, %v1761_v0  ;;  %1251 = vmatprep.mubr.msk.f32.mxu0 %vm1762_vm0, %v1761_v0  ;;  %v2001_v6 = vld [vmem:[#allocation7 + $0x70] sm:$0xff]  ;;  %v2004_v7 = vld [vmem:[#allocation9 + $0x58] sm:$0xff]  ;;  %v2007_v8 = vld [vmem:[#allocation7 + $0x68] sm:$0xff]  ;;  %s2201_s7 = sld [smem:[#allocation3 + $0x1]]  ;;  %s973_s9 = sshll.u32 %s2246_s17, 4  ;;  %s2291_s9 = int_to_ptr.vmem [resolvable:$true] %s973_s9 }
  0x78   : > { %1255 = vmatpush3.msra.mxu1 %v1985_v1  ;;  %1220 = vmatpush3.msra.mxu0 %v1997_v5  ;;  %v2012_v9 = vld [vmem:[#allocation9 + $0x50] sm:$0xff]  ;;  %v2015_v10 = vld [vmem:[#allocation7 + $0x60] sm:$0xff]  ;;  %v2020_v11 = vld [vmem:[#allocation9 + $0x48] sm:$0xff]  ;;  %s1112_s12 = sshll.u32 %s1825_s0, 8  ;;  %s960_s21 = scalar_lea.sflag [#allocation6], %s1959_s23 }
  0x79   : > { %1256 = vmatprep.subr.mxu1 %v1761_v0  ;;  %1221 = vmatprep.subr.mxu0 %v1761_v0  ;;  %v2023_v12 = vld [vmem:[#allocation7 + $0x58] sm:$0xff]  ;;  %v2028_v13 = vld [vmem:[#allocation9 + $0x40] sm:$0xff]  ;;  %v2031_v14 = vld [vmem:[#allocation7 + $0x50] sm:$0xff]  ;;  %s2296_s8 = scalar_lea.hbm %s2346_s6, %s1112_s12  ;;  %s1677_s11 = scalar_lea.vmem %s2291_s9, 256 }
  0x7a   : > { %1257 = vmatpush3.msra.mxu1 %v1987_v2  ;;  %1222 = vmatpush3.msra.mxu0 %v2001_v6  ;;  %v2036_v15 = vld [vmem:[#allocation9 + $0x38] sm:$0xff]  ;;  %v2039_v16 = vld [vmem:[#allocation7 + $0x48] sm:$0xff]  ;;  %v2044_v17 = vld [vmem:[#allocation9 + $0x30] sm:$0xff]  ;;  %p1678_p12 = scmp.ne.s32.totalorder %s2291_s9, %s1677_s11  ;;  %p2366_p9 = scmp.ne.s32.totalorder %s2357_s19, 0 }
  0x7b   : > { %1258 = vmatprep.subr.mxu1 %v1761_v0  ;;  %1223 = vmatprep.subr.mxu0 %v1761_v0  ;;  %v2047_v18 = vld [vmem:[#allocation7 + $0x40] sm:$0xff]  ;;  %v2052_v19 = vld [vmem:[#allocation9 + $0x28] sm:$0xff]  ;;  %v2055_v20 = vld [vmem:[#allocation7 + $0x38] sm:$0xff]  ;;  %s1763_s0 = smov [#allocation13]  }
  0x7c   : > { %1259 = vmatpush3.msra.mxu1 %v1991_v3  ;;  %1224 = vmatpush3.msra.mxu0 %v2007_v8  ;;  %v2060_v21 = vld [vmem:[#allocation9 + $0x20] sm:$0xff]  ;;  %v314_v22 = vld [vmem:[#allocation7 + $0x30] sm:$0xff]  ;;  %v2066_v23 = vld [vmem:[#allocation9 + $0x18] sm:$0xff]  ;;  %p1679_p13 = pnand %p1678_p12, %p2366_p9  ;;  %s1681_s18 = sshll.u32 %s1763_s0, 4  ;;  %s1682_s18 = int_to_ptr.vmem [resolvable:$false] %s1681_s18 }
  0x7d   : > { %1260 = vmatprep.subr.mxu1 %v1761_v0  ;;  %1225 = vmatprep.subr.mxu0 %v1761_v0  ;;  %v313_v24 = vld [vmem:[#allocation7 + $0x28] sm:$0xff]  ;;  %v2071_v25 = vld [vmem:[#allocation9 + $0x10] sm:$0xff]  ;;  %v312_v26 = vld [vmem:[#allocation7 + $0x20] sm:$0xff]  ;;  %s1683_s10 = scalar_lea.vmem %s1682_s18, 512  ;;  %p1684_p1 = scmp.lt.s32.totalorder %s2291_s9, %s1682_s18 }
  0x7e   : > { %1261 = vmatpush3.msra.mxu1 %v1995_v4  ;;  %1226 = vmatpush3.msra.mxu0 %v2015_v10  ;;  %v2076_v27 = vld [vmem:[#allocation9 + $0x8] sm:$0xff]  ;;  %v311_v28 = vld [vmem:[#allocation7 + $0x18] sm:$0xff]  ;;  %v2081_v29 = vld [vmem:[#allocation9] sm:$0xff]  ;;  %p1680_p0 = pneg %p1679_p13  ;;  %p1685_p2 = scmp.lt.s32.totalorder %s1683_s10, %s1677_s11 }
  0x7f   : > { %1262 = vmatprep.subr.mxu1 %v1761_v0  ;;  %1227 = vmatprep.subr.mxu0 %v1761_v0  ;;  %v310_v30 = vld [vmem:[#allocation7 + $0x10] sm:$0xff]  ;;  %v309_v32 = vld [vmem:[#allocation7 + $0x8] sm:$0xff]  ;;  %v308_v33 = vld [vmem:[#allocation7] sm:$0xff] }
  0x80   : > { %1263 = vmatpush3.msra.mxu1 %v2004_v7  ;;  %1228 = vmatpush3.msra.mxu0 %v2023_v12  ;;  %v357_v31 = vld [vmem:[%s1965_s13] sm:$0xff]  ;;  %v2132_v50 = vld [vmem:[#allocation12 + $0x70] sm:$0xff]  ;;  %v2142_v52 = vld [vmem:[#allocation12 + $0x60] sm:$0xff]  ;;  %p1686_p4 = por %p1685_p2, %p1684_p1 }
  0x81   : > { %1264 = vmatprep.subr.mxu1 %v1761_v0  ;;  %1229 = vmatprep.subr.mxu0 %v1761_v0  ;;  %v2124_v48 = vld [vmem:[#allocation10] sm:$0xff]  ;;  %v2138_v51 = vld [vmem:[#allocation12 + $0x68] sm:$0xff]  ;;  %v2150_v54 = vld [vmem:[#allocation12 + $0x50] sm:$0xff] }
  0x82   : > { %1265 = vmatpush3.msra.mxu1 %v2012_v9  ;;  %1230 = vmatpush3.msra.mxu0 %v2031_v14  ;;  %v2126_v49 = vld [vmem:[#allocation12 + $0x78] sm:$0xff]  ;;  %v2154_v55 = vld [vmem:[#allocation12 + $0x48] sm:$0xff]  ;;  %v2158_v56 = vld [vmem:[#allocation12 + $0x40] sm:$0xff]  ;;  %p1687_p5 = pnand %p1686_p4, %p1680_p0 }
  0x83   : > { %1266 = vmatprep.subr.mxu1 %v1761_v0  ;;  %1231 = vmatprep.subr.mxu0 %v1761_v0  ;;  %v2146_v53 = vld [vmem:[#allocation12 + $0x58] sm:$0xff]  ;;  %v2166_v58 = vld [vmem:[#allocation12 + $0x30] sm:$0xff]  ;;  %v2170_v59 = vld [vmem:[#allocation12 + $0x28] sm:$0xff] }
  0x84   : > { %1267 = vmatpush3.msra.mxu1 %v2020_v11  ;;  %1232 = vmatpush3.msra.mxu0 %v2039_v16  ;;  %v2162_v57 = vld [vmem:[#allocation12 + $0x38] sm:$0xff]  ;;  %v2174_v60 = vld [vmem:[#allocation12 + $0x20] sm:$0xff]  ;;  %v2184_v62 = vld [vmem:[#allocation12 + $0x10] sm:$0xff] }
  0x85   : > { %1268 = vmatprep.subr.mxu1 %v1761_v0  ;;  %1233 = vmatprep.subr.mxu0 %v1761_v0  ;;  %v2178_v61 = vld [vmem:[#allocation12 + $0x18] sm:$0xff]  ;;  %v2188_v63 = vld [vmem:[#allocation12 + $0x8] sm:$0xff] }
  0x86   : > { %1269 = vmatpush3.msra.mxu1 %v2028_v13  ;;  %1234 = vmatpush3.msra.mxu0 %v2047_v18 }
  0x87   : > { %1270 = vmatprep.subr.mxu1 %v1761_v0  ;;  %1235 = vmatprep.subr.mxu0 %v1761_v0 }
  0x88   : > { %1271 = vmatpush3.msra.mxu1 %v2036_v15  ;;  %1236 = vmatpush3.msra.mxu0 %v2055_v20 }
  0x89   : > { %1272 = vmatprep.subr.mxu1 %v1761_v0  ;;  %1237 = vmatprep.subr.mxu0 %v1761_v0 }
  0x8a   : > { %1273 = vmatpush3.msra.mxu1 %v2044_v17  ;;  %1238 = vmatpush3.msra.mxu0 %v314_v22 }
  0x8b   : > { %1274 = vmatprep.subr.mxu1 %v1761_v0  ;;  %1239 = vmatprep.subr.mxu0 %v1761_v0 }
  0x8c   : > { %1275 = vmatpush3.msra.mxu1 %v2052_v19  ;;  %1240 = vmatpush3.msra.mxu0 %v313_v24 }
  0x8d   : > { %1276 = vmatprep.subr.mxu1 %v1761_v0  ;;  %1241 = vmatprep.subr.mxu0 %v1761_v0 }
  0x8e   : > { %1277 = vmatpush3.msra.mxu1 %v2060_v21  ;;  %1242 = vmatpush3.msra.mxu0 %v312_v26 }
  0x8f   : > { %1278 = vmatprep.subr.mxu1 %v1761_v0  ;;  %1243 = vmatprep.subr.mxu0 %v1761_v0 }
  0x90   : > { %1279 = vmatpush3.msra.mxu1 %v2066_v23  ;;  %1244 = vmatpush3.msra.mxu0 %v311_v28 }
  0x91   : > { %1280 = vmatprep.subr.mxu1 %v1761_v0  ;;  %1245 = vmatprep.subr.mxu0 %v1761_v0 }
  0x92   : > { %1281 = vmatpush3.msra.mxu1 %v2071_v25  ;;  %1246 = vmatpush3.msra.mxu0 %v310_v30 }
  0x93   : > { %1282 = vmatprep.subr.mxu1 %v1761_v0  ;;  %1247 = vmatprep.subr.mxu0 %v1761_v0 }
  0x94   : > { %1283 = vmatpush3.msra.mxu1 %v2076_v27  ;;  %1248 = vmatpush3.msra.mxu0 %v309_v32 }
  0x95   : > { %1284 = vmatprep.subr.mxu1 %v1761_v0  ;;  %1249 = vmatprep.subr.mxu0 %v1761_v0 }
  0x96   : > { %1285 = vmatpush3.msra.mxu1 %v2081_v29  ;;  %1250 = vmatpush3.msra.mxu0 %v308_v33 }
  0x97   : > { %1287 = vmatmul.mubr.f32.vlgmr.msra.gmra.mxu1 %v357_v31  ;;  %1289 = vmatprep.subr.mxu1 %v1761_v0 }
  0x98   : > { %1291 = vmatprep.mubr.msk.f32.mxu1 %vm1762_vm0, %v1761_v0  ;;  %1252 = vmatmul.mubr.f32.vlgmr.msra.gmra.mxu0 %v357_v31 }
  0x99   : > { %1329 = vmatprep.subr.mxu0 %v1761_v0  ;;  %1361 = vmatprep.mubr.msk.f32.mxu0 %vm1762_vm0, %v1761_v0 }
  0x9a   : > { %1330 = vmatpush3.msra.mxu0 %v1997_v5  ;;  %v2192_v5 = vld [vmem:[#allocation12] sm:$0xff] }
  0x9b   : > { %1331 = vmatprep.subr.mxu0 %v1761_v0 }
  0x9c   : > { %1332 = vmatpush3.msra.mxu0 %v2001_v6  ;;  %v1103_v6 = vld [vmem:[%s1965_s13 + $0x8] sm:$0xff] }
  0x9d   : > { %1333 = vmatprep.subr.mxu0 %v1761_v0 }
  0x9e   : > { %1334 = vmatpush3.msra.mxu0 %v2007_v8 }
  0x9f   : > { %1335 = vmatprep.subr.mxu0 %v1761_v0 }
  0xa0   : > { %1336 = vmatpush3.msra.mxu0 %v2015_v10  ;;  %v583_v10 = vstv %s2199_s29 }
  0xa1   : > { %1337 = vmatprep.subr.mxu0 %v1761_v0 }
  0xa2   : > { %1338 = vmatpush3.msra.mxu0 %v2023_v12  ;;  %v586_v12 = vstv %s2201_s7 }
  0xa3   : > { %1339 = vmatprep.subr.mxu0 %v1761_v0 }
  0xa4   : > { %1340 = vmatpush3.msra.mxu0 %v2031_v14 }
  0xa5   : > { %1341 = vmatprep.subr.mxu0 %v1761_v0 }
  0xa6   : > { %1342 = vmatpush3.msra.mxu0 %v2039_v16 }
  0xa7   : > { %1343 = vmatprep.subr.mxu0 %v1761_v0 }
  0xa8   : > { %1344 = vmatpush3.msra.mxu0 %v2047_v18 }
  0xa9   : > { %1345 = vmatprep.subr.mxu0 %v1761_v0 }
  0xaa   : > { %1346 = vmatpush3.msra.mxu0 %v2055_v20 }
  0xab   : > { %1347 = vmatprep.subr.mxu0 %v1761_v0 }
  0xac   : > { %1348 = vmatpush3.msra.mxu0 %v314_v22 }
  0xad   : > { %1349 = vmatprep.subr.mxu0 %v1761_v0 }
  0xae   : > { %1350 = vmatpush3.msra.mxu0 %v313_v24 }
  0xaf   : > { %1351 = vmatprep.subr.mxu0 %v1761_v0 }
  0xb0   : > { %1352 = vmatpush3.msra.mxu0 %v312_v26 }
  0xb1   : > { %1353 = vmatprep.subr.mxu0 %v1761_v0 }
  0xb2   : > { %1354 = vmatpush3.msra.mxu0 %v311_v28 }
  0xb3   : > { %1355 = vmatprep.subr.mxu0 %v1761_v0 }
  0xb4   : > { %1356 = vmatpush3.msra.mxu0 %v310_v30 }
  0xb5   : > { %1357 = vmatprep.subr.mxu0 %v1761_v0 }
  0xb6   : > { %1358 = vmatpush3.msra.mxu0 %v309_v32 }
  0xb7   : > { %1359 = vmatprep.subr.mxu0 %v1761_v0 }
  0xb8   : > { %1360 = vmatpush3.msra.mxu0 %v308_v33 }
  0xb9   : > { %1399 = vmatprep.subr.mxu0 %v1761_v0  ;;  %1362 = vmatmul.mubr.f32.vlgmr.msra.gmra.mxu0 %v1103_v6 }
  0xba   : > { %1401 = vmatprep.mubr.msk.f32.mxu0 %vm1762_vm0, %v1761_v0 }
 0x157   : > { %v494_v34 = vpop.f32.mrf.mxu1 }
 0x158   : > { %v498_v35 = vmul.f32 %v494_v34, %v494_v34  ;;  %v424_v38 = vpop.f32.mrf.mxu0 }
 0x159   : > { %v1288_v36 = vpop.f32.mrf.mxu1 }
 0x15a   : > { %v499_v37 = vmul.f32 %v498_v35, %v494_v34  ;;  %v1253_v40 = vpop.f32.mrf.mxu0 }
 0x15c   : > { %v500_v39 = vmul.f32 0.044715, %v499_v37 }
 0x15e   : > { %v501_v41 = vadd.f32 %v500_v39, %v494_v34 }
 0x160   : > { %v502_v42 = vmul.f32 0.7978846, %v501_v41 }
 0x162   : > { %1533 = vtanh.f32 %v502_v42 }
 0x16f   : > { %v1534_v43 = vpop.eup %1533 }
 0x170   : > { %v504_v44 = vadd.f32 1.0, %v1534_v43 }
 0x172   : > { %v505_v45 = vmul.f32 0.5, %v504_v44 }
 0x174   : > { %v506_v46 = vmul.f32 %v505_v45, %v494_v34 }
 0x176   : > { %v2122_v47 = vmul.f32 %v506_v46, %v424_v38 }
 0x178   : > { %1290 = vmatpush3.msra.mxu1 %v2122_v47 }
 0x179   : > { %1292 = vmatmul.mubr.msk.f32.vlgmr.msra.gmra.mxu1 %vm508_vm1, %v2124_v48  ;;  %1294 = vmatprep.subr.mxu1 %v1761_v0 }
 0x17a   : > { %1295 = vmatpush3.msra.mxu1 %v2126_v49  ;;  %1326 = vmatprep.mubr.msk.f32.mxu1 %vm1762_vm0, %v1761_v0 }
 0x17b   : > { %1296 = vmatprep.subr.mxu1 %v1761_v0 }
 0x17c   : > { %1297 = vmatpush3.msra.mxu1 %v2132_v50 }
 0x17d   : > { %1298 = vmatprep.subr.mxu1 %v1761_v0 }
 0x17e   : > { %1299 = vmatpush3.msra.mxu1 %v2138_v51 }
 0x17f   : > { %1300 = vmatprep.subr.mxu1 %v1761_v0 }
 0x180   : > { %1301 = vmatpush3.msra.mxu1 %v2142_v52 }
 0x181   : > { %1302 = vmatprep.subr.mxu1 %v1761_v0 }
 0x182   : > { %1303 = vmatpush3.msra.mxu1 %v2146_v53 }
 0x183   : > { %1304 = vmatprep.subr.mxu1 %v1761_v0 }
 0x184   : > { %1305 = vmatpush3.msra.mxu1 %v2150_v54 }
 0x185   : > { %1306 = vmatprep.subr.mxu1 %v1761_v0 }
 0x186   : > { %1307 = vmatpush3.msra.mxu1 %v2154_v55 }
 0x187   : > { %1308 = vmatprep.subr.mxu1 %v1761_v0 }
 0x188   : > { %1309 = vmatpush3.msra.mxu1 %v2158_v56 }
 0x189   : > { %1310 = vmatprep.subr.mxu1 %v1761_v0 }
 0x18a   : > { %1311 = vmatpush3.msra.mxu1 %v2162_v57 }
 0x18b   : > { %1312 = vmatprep.subr.mxu1 %v1761_v0 }
 0x18c   : > { %1313 = vmatpush3.msra.mxu1 %v2166_v58 }
 0x18d   : > { %1314 = vmatprep.subr.mxu1 %v1761_v0 }
 0x18e   : > { %1315 = vmatpush3.msra.mxu1 %v2170_v59 }
 0x18f   : > { %1316 = vmatprep.subr.mxu1 %v1761_v0 }
 0x190   : > { %1317 = vmatpush3.msra.mxu1 %v2174_v60 }
 0x191   : > { %1318 = vmatprep.subr.mxu1 %v1761_v0 }
 0x192   : > { %1319 = vmatpush3.msra.mxu1 %v2178_v61 }
 0x193   : > { %1320 = vmatprep.subr.mxu1 %v1761_v0 }
 0x194   : > { %1321 = vmatpush3.msra.mxu1 %v2184_v62 }
 0x195   : > { %1322 = vmatprep.subr.mxu1 %v1761_v0 }
 0x196   : > { %1323 = vmatpush3.msra.mxu1 %v2188_v63 }
 0x197   : > { %1324 = vmatprep.subr.mxu1 %v1761_v0 }
 0x198   : > { %1325 = vmatpush3.msra.mxu1 %v2192_v5 }
 0x199   : > { %1364 = vmatprep.subr.mxu1 %v1761_v0 }
 0x239   : > { %v578_v8 = vpop.f32.mrf.mxu1 }
 0x23a   : > { %v582_v14 = vmul.f32 %v578_v8, %v2122_v47  ;;  %v585_v16 = vsub.f32 %v2122_v47, %v578_v8 }
 0x23b   : > { %v1293_v18 = vpop.f32.mrf.mxu1 }
 0x23c   : > { %v584_v20 = vmul.f32 %v583_v10, %v582_v14  ;;  %v587_v22 = vmul.f32 %v586_v12, %v585_v16 }
 0x23e   : > { %v588_v24 = vadd.f32 %v587_v22, %v584_v20 }
 0x240   : > { %1327 = vmatmul.mubr.f32.vlgmr.msra.gmra.mxu1 %v588_v24 }
 0x241   : > { %1365 = vmatpush3.msra.mxu1 %v1985_v1  ;;  %1396 = vmatprep.mubr.msk.f32.mxu1 %vm1762_vm0, %v1761_v0  ;;  %v728_v1 = vpop.f32.mrf.mxu0 }
 0x242   : > { %1366 = vmatprep.subr.mxu1 %v1761_v0 }
 0x243   : > { %1367 = vmatpush3.msra.mxu1 %v1987_v2  ;;  %v1363_v2 = vpop.f32.mrf.mxu0 }
 0x244   : > { %1368 = vmatprep.subr.mxu1 %v1761_v0 }
 0x245   : > { %1369 = vmatpush3.msra.mxu1 %v1991_v3 }
 0x246   : > { %1370 = vmatprep.subr.mxu1 %v1761_v0 }
 0x247   : > { %1371 = vmatpush3.msra.mxu1 %v1995_v4 }
 0x248   : > { %1372 = vmatprep.subr.mxu1 %v1761_v0 }
 0x249   : > { %1373 = vmatpush3.msra.mxu1 %v2004_v7 }
 0x24a   : > { %1374 = vmatprep.subr.mxu1 %v1761_v0 }
 0x24b   : > { %1375 = vmatpush3.msra.mxu1 %v2012_v9 }
 0x24c   : > { %1376 = vmatprep.subr.mxu1 %v1761_v0 }
 0x24d   : > { %1377 = vmatpush3.msra.mxu1 %v2020_v11 }
 0x24e   : > { %1378 = vmatprep.subr.mxu1 %v1761_v0 }
 0x24f   : > { %1379 = vmatpush3.msra.mxu1 %v2028_v13 }
 0x250   : > { %1380 = vmatprep.subr.mxu1 %v1761_v0 }
 0x251   : > { %1381 = vmatpush3.msra.mxu1 %v2036_v15 }
 0x252   : > { %1382 = vmatprep.subr.mxu1 %v1761_v0 }
 0x253   : > { %1383 = vmatpush3.msra.mxu1 %v2044_v17 }
 0x254   : > { %1384 = vmatprep.subr.mxu1 %v1761_v0 }
 0x255   : > { %1385 = vmatpush3.msra.mxu1 %v2052_v19 }
 0x256   : > { %1386 = vmatprep.subr.mxu1 %v1761_v0 }
 0x257   : > { %1387 = vmatpush3.msra.mxu1 %v2060_v21 }
 0x258   : > { %1388 = vmatprep.subr.mxu1 %v1761_v0 }
 0x259   : > { %1389 = vmatpush3.msra.mxu1 %v2066_v23 }
 0x25a   : > { %1390 = vmatprep.subr.mxu1 %v1761_v0 }
 0x25b   : > { %1391 = vmatpush3.msra.mxu1 %v2071_v25 }
 0x25c   : > { %1392 = vmatprep.subr.mxu1 %v1761_v0 }
 0x25d   : > { %1393 = vmatpush3.msra.mxu1 %v2076_v27 }
 0x25e   : > { %1394 = vmatprep.subr.mxu1 %v1761_v0 }
 0x25f   : > { %1395 = vmatpush3.msra.mxu1 %v2081_v29 }
 0x260   : > { %1397 = vmatmul.mubr.f32.vlgmr.msra.gmra.mxu1 %v1103_v6 }
 0x300   : > { %v655_v3 = vpop.f32.mrf.mxu1 }
 0x301   : > { %659 = vst [vmem:[%s2246_s17] sm:$0xff] %v655_v3 }
 0x302   : > { %v1328_v4 = vpop.f32.mrf.mxu1 }
 0x320   : > { %v798_v7 = vpop.f32.mrf.mxu1 }
 0x321   : > { %v802_v9 = vmul.f32 %v798_v7, %v798_v7 }
 0x322   : > { %v1398_v11 = vpop.f32.mrf.mxu1 }
 0x323   : > { %v803_v13 = vmul.f32 %v802_v9, %v798_v7 }
 0x325   : > { %v804_v15 = vmul.f32 0.044715, %v803_v13 }
 0x327   : > { %v805_v17 = vadd.f32 %v804_v15, %v798_v7 }
 0x329   : > { %v806_v19 = vmul.f32 0.7978846, %v805_v17 }
 0x32b   : > { %1535 = vtanh.f32 %v806_v19 }
 0x338   : > { %v1536_v21 = vpop.eup %1535 }
 0x339   : > { %v808_v23 = vadd.f32 1.0, %v1536_v21 }
 0x33b   : > { %v809_v25 = vmul.f32 0.5, %v808_v23 }
 0x33d   : > { %v810_v26 = vmul.f32 %v809_v25, %v798_v7 }
 0x33f   : > { %v811_v27 = vmul.f32 %v810_v26, %v728_v1 }
 0x341   : > { %1400 = vmatpush3.msra.mxu0 %v811_v27 }
 0x342   : > { %1402 = vmatmul.mubr.msk.f32.vlgmr.msra.gmra.mxu0 %vm508_vm1, %v2124_v48  ;;  %1404 = vmatprep.subr.mxu0 %v1761_v0 }
 0x343   : > { %1405 = vmatpush3.msra.mxu0 %v2126_v49  ;;  %1436 = vmatprep.mubr.msk.f32.mxu0 %vm1762_vm0, %v1761_v0 }
 0x344   : > { %1406 = vmatprep.subr.mxu0 %v1761_v0 }
 0x345   : > { %1407 = vmatpush3.msra.mxu0 %v2132_v50 }
 0x346   : > { %1408 = vmatprep.subr.mxu0 %v1761_v0 }
 0x347   : > { %1409 = vmatpush3.msra.mxu0 %v2138_v51 }
 0x348   : > { %1410 = vmatprep.subr.mxu0 %v1761_v0 }
 0x349   : > { %1411 = vmatpush3.msra.mxu0 %v2142_v52 }
 0x34a   : > { %1412 = vmatprep.subr.mxu0 %v1761_v0 }
 0x34b   : > { %1413 = vmatpush3.msra.mxu0 %v2146_v53 }
 0x34c   : > { %1414 = vmatprep.subr.mxu0 %v1761_v0 }
 0x34d   : > { %1415 = vmatpush3.msra.mxu0 %v2150_v54 }
 0x34e   : > { %1416 = vmatprep.subr.mxu0 %v1761_v0 }
 0x34f   : > { %1417 = vmatpush3.msra.mxu0 %v2154_v55 }
 0x350   : > { %1418 = vmatprep.subr.mxu0 %v1761_v0 }
 0x351   : > { %1419 = vmatpush3.msra.mxu0 %v2158_v56 }
 0x352   : > { %1420 = vmatprep.subr.mxu0 %v1761_v0 }
 0x353   : > { %1421 = vmatpush3.msra.mxu0 %v2162_v57 }
 0x354   : > { %1422 = vmatprep.subr.mxu0 %v1761_v0 }
 0x355   : > { %1423 = vmatpush3.msra.mxu0 %v2166_v58 }
 0x356   : > { %1424 = vmatprep.subr.mxu0 %v1761_v0 }
 0x357   : > { %1425 = vmatpush3.msra.mxu0 %v2170_v59 }
 0x358   : > { %1426 = vmatprep.subr.mxu0 %v1761_v0 }
 0x359   : > { %1427 = vmatpush3.msra.mxu0 %v2174_v60 }
 0x35a   : > { %1428 = vmatprep.subr.mxu0 %v1761_v0 }
 0x35b   : > { %1429 = vmatpush3.msra.mxu0 %v2178_v61 }
 0x35c   : > { %1430 = vmatprep.subr.mxu0 %v1761_v0 }
 0x35d   : > { %1431 = vmatpush3.msra.mxu0 %v2184_v62 }
 0x35e   : > { %1432 = vmatprep.subr.mxu0 %v1761_v0 }
 0x35f   : > { %1433 = vmatpush3.msra.mxu0 %v2188_v63 }
 0x360   : > { %1434 = vmatprep.subr.mxu0 %v1761_v0 }
 0x361   : > { %1435 = vmatpush3.msra.mxu0 %v2192_v5 }
 0x402   : > { %v878_v28 = vpop.f32.mrf.mxu0 }
 0x403   : > { %v882_v29 = vmul.f32 %v878_v28, %v811_v27  ;;  %v884_v30 = vsub.f32 %v811_v27, %v878_v28 }
 0x404   : > { %v1403_v31 = vpop.f32.mrf.mxu0 }
 0x405   : > { %v883_v32 = vmul.f32 %v882_v29, %v583_v10  ;;  %v885_v33 = vmul.f32 %v884_v30, %v586_v12 }
 0x407   : > { %v886_v34 = vadd.f32 %v885_v33, %v883_v32 }
 0x409   : > { %1437 = vmatmul.mubr.f32.vlgmr.msra.gmra.mxu0 %v886_v34 }
 0x4c9   : > { %v953_v0 = vpop.f32.mrf.mxu0 }
 0x4ca   : > { %1105 = vst [vmem:[%s2246_s17 + $0x8] sm:$0xff] %v953_v0 }
 0x4cb   : > { %v1438_v35 = vpop.f32.mrf.mxu0 }
 0x4cc   : > { %1690 = shalt.err (!%p1687_p5)
}
 0x4cd   : > { %s1691_s16 = scalar_lea.hbm %s2296_s8, 256  ;;  %s1695_s29 = scalar_lea.hbm %s2346_s6, 512 }
 0x4ce   : > { %p1692_p6 = scmp.ne.s32.totalorder %s2296_s8, %s1691_s16  ;;  %p1696_p11 = scmp.lt.s32.totalorder %s2296_s8, %s2346_s6 }
 0x4cf   : > { %p1697_p10 = scmp.lt.s32.totalorder %s1695_s29, %s1691_s16 }
 0x4d0   : > { %p1693_p8 = pnand %p1692_p6, %p2366_p9 }
 0x4d1   : > { %p1698_p7 = por %p1697_p10, %p1696_p11 }
 0x4d2   : > { %p1694_p3 = pneg %p1693_p8 }
 0x4d4   : > { %p1699_p12 = pnand %p1698_p7, %p1694_p3 }
 0x4d6   : > { %1702 = shalt.err (!%p1699_p12)
}
 0x4d7   : > { %s1764_s12 = smov 128   ;;  %s1765_s14 = smov 8  }
 0x4d8   : > { %1457 = dma.vmem_to_hbm [thread:$0]  (%p2366_p9), %s2291_s9, 256, %s2296_s8, %s960_s21, %s1764_s12, %s1764_s12, %s1765_s14  }
 0x4d9 PF: > { %s988_s28 = sand.u32 1, %s1739_s24   ;;  %p2367_p13 = scmp.ne.s32.totalorder %s2353_s30, 0 }
 0x4da   : > { %p2368_p0 = scmp.ge.s32.totalorder %s1751_s27, 2  ;;  %s989_s11 = scalar_lea.sflag [#allocation6], %s988_s28 }
 0x4dc   : > { %p1477_p1 = pnand %p2368_p0, %p2367_p13 }
 0x4de   : > { %p1478_p2 = pneg %p1477_p1 }
 0x4e0   : > { %1734 = dma.done.wait (%p1478_p2), %s989_s11, 256  }
 0x4e1   : > { %1736 = vsyncadd (%p1478_p2), %s989_s11, 4294967040  ;;  %p25_p4 = scmp.ge.s32.totalorder %s1901_s15, 4   ;;  %s2369_s24 = smov %s1743_s25 }
 0x4e2   : > { %s2370_s25 = smov %s1747_s26  ;;  %s2371_s26 = smov %s1917_s20 }
 0x4e3   : > { %s2372_s27 = smov %s1901_s15  ;;  %27 = sbr.rel (!%p25_p4) target bundleno = 12 (0xc), region = 103 }
 0x4e8   :  { %994 = vsyncpa [#allocation5], 1 }
 0x4e9   :  { %996 = vsyncpa [#allocation5 + $0x1], 1 }
 0x4ea   :  { %997 = vsyncpa [#allocation8], 1 }
 0x4eb   :  { %998 = vsyncpa [#allocation11], 1 }
 0x4ec   :  { %999 = vsyncpa [#allocation6], 1 }
 0x4ed   :  { %1001 = vsyncpa [#allocation6 + $0x1], 1 }

</bundles_post_ra>
